<compile_context>
chip_gen: v5e
topology: v5e:2x2
jax: 0.10.0
libtpu: 0.0.40
codegen_flags: <defaults>
</compile_context>

<pallas_src>
import functools
import math

import jax
import jax.numpy as jnp
from jax.experimental import pallas as pl
from jax.experimental.pallas import tpu as pltpu


def _leaky_relu(x, alpha):
    return jnp.where(x > 0, x, alpha * x)


def _round_up(x, m):
    return ((x + m - 1) // m) * m


def mlp_gat_kernel(feat_ref, adj_ref, W_ref, a1_ref, a2_ref, a12_ref,
                   we1_ref, be1_ref, we2_ref, be2_ref,
                   wi0a_ref, wi0b_ref, bi0_ref, wi1_ref, bi1_ref,
                   out_ref, *, alpha, n_real, apply_elu):
    f32 = jnp.float32
    bf16 = jnp.bfloat16

    bt, n_p, fin_p = feat_ref.shape
    fo_p = W_ref.shape[1]

    feat = feat_ref[...]                                   # (Bt, Np, Fp)  f32
    adj = adj_ref[...]                                     # (Bt, Np, Np)  f32
    feat_b = feat.astype(bf16)
    feat2_b = feat_b.reshape(bt * n_p, fin_p)              # flatten for weight matmuls

    # ---------------- attention ----------------
    h2 = jnp.dot(feat2_b, W_ref[...].astype(bf16),
                 preferred_element_type=f32)               # (Bt*Np, Fo)  f32 acc
    h = h2.reshape(bt, n_p, fo_p)
    h2_b = h2.astype(bf16)
    h_b = h2_b.reshape(bt, n_p, fo_p)

    # Ay = h @ a_2   (VPU broadcast-mul + lane reduce, f32)
    Ay = jnp.sum(h * a2_ref[...], axis=-1, keepdims=True)  # (Bt, Np, 1)

    # A_xy_1 = h @ a_12 ; then fold Ax into the (N,N) matmul:
    #   (A_xy_1[i] + a1) . h_j = A_xy[i,j] + Ax[j]   (== A_xy + Ax^T)
    axy1 = jnp.dot(h2_b, a12_ref[...].astype(bf16),
                   preferred_element_type=f32).reshape(bt, n_p, fo_p)
    axy1 = axy1 + a1_ref[...]                              # (Bt, Np, Fo)  f32
    logits = jnp.einsum('bnp,bmp->bnm', axy1.astype(bf16), h_b,
                        preferred_element_type=f32) + Ay   # (Bt, Np, Np)

    e = _leaky_relu(logits, alpha)
    e = jnp.where(adj > 0, e, f32(-9e15))
    if n_real != n_p:
        # Padded key columns must contribute exactly zero probability mass
        # (keeps the all-masked-row corner case identical to the reference).
        col = jax.lax.broadcasted_iota(jnp.int32, e.shape, 2)
        e = jnp.where(col < n_real, e, -jnp.inf)

    e_max = jnp.max(e, axis=-1, keepdims=True)
    p = jnp.exp(e - e_max)
    attention = p * pl.reciprocal(jnp.sum(p, axis=-1, keepdims=True), approx=True)
    # TODO(synk): F.dropout on attention omitted (deterministic / eval-mode semantics).

    # ---------------- aggregate ----------------
    h_prime = jnp.einsum('bnm,bmf->bnf', attention.astype(bf16), feat_b,
                         preferred_element_type=f32)       # (Bt, Np, Fp)
    hp2_b = h_prime.astype(bf16).reshape(bt * n_p, fin_p)

    # ---------------- update: BiInteractionLayer ----------------
    embed1 = _leaky_relu(
        jnp.dot(feat2_b, we1_ref[...].astype(bf16),
                preferred_element_type=f32) + be1_ref[...], alpha)   # (Bt*Np, E)
    embed2 = _leaky_relu(
        jnp.dot(hp2_b, we2_ref[...].astype(bf16),
                preferred_element_type=f32) + be2_ref[...], alpha)   # (Bt*Np, E)

    # cat([embed1, embed2], -1) @ Wi0 == embed1 @ wi0_a + embed2 @ wi0_b
    x = (jnp.dot(embed1.astype(bf16), wi0a_ref[...].astype(bf16),
                 preferred_element_type=f32)
         + jnp.dot(embed2.astype(bf16), wi0b_ref[...].astype(bf16),
                   preferred_element_type=f32)
         + bi0_ref[...])
    x = _leaky_relu(x, alpha)                                        # (Bt*Np, Fo)
    x = _leaky_relu(
        jnp.dot(x.astype(bf16), wi1_ref[...].astype(bf16),
                preferred_element_type=f32) + bi1_ref[...], alpha)   # (Bt*Np, Fo)

    if apply_elu:  # outer `activation` of MLPGraphAttentionLayer (ELU)
        # clamp before exp so the dead branch never produces inf
        x = jnp.where(x > 0, x, jnp.exp(jnp.minimum(x, 0.0)) - 1.0)

    out_ref[...] = x.reshape(bt, n_p, fo_p).astype(out_ref.dtype)


def mlp_graph_attention(feat, adj, params, *, alpha=0.2, apply_elu=True,
                        lane=128, vmem_block_budget=8 << 20):
    B, N, Fin = feat.shape
    Fout = params["W"].shape[1]
    E = params["we1"].shape[1]

    N_p = _round_up(N, lane)
    Fin_p = _round_up(Fin, lane)
    Fout_p = _round_up(Fout, lane)
    E_p = _round_up(E, lane)

    # ---- zero-pad activations & parameters to lane-dense shapes (exact) ----
    feat_p = jnp.pad(feat.astype(jnp.float32),
                     ((0, 0), (0, N_p - N), (0, Fin_p - Fin)))
    adj_p = jnp.pad(adj.astype(jnp.float32),
                    ((0, 0), (0, N_p - N), (0, N_p - N)))

    def pad2(p, r, c):
        return jnp.pad(p.astype(jnp.float32),
                       ((0, r - p.shape[0]), (0, c - p.shape[1])))

    W = pad2(params["W"], Fin_p, Fout_p)
    a1 = pad2(params["a1"], 1, Fout_p)
    a2 = pad2(params["a2"], 1, Fout_p)
    a12 = pad2(params["a12"], Fout_p, Fout_p)
    we1 = pad2(params["we1"], Fin_p, E_p)
    be1 = pad2(params["be1"], 1, E_p)
    we2 = pad2(params["we2"], Fin_p, E_p)
    be2 = pad2(params["be2"], 1, E_p)
    # pre-split the concat weight so the kernel never slices the embed dim
    wi0a = pad2(params["wi0"][:E], E_p, Fout_p)
    wi0b = pad2(params["wi0"][E:], E_p, Fout_p)
    bi0 = pad2(params["bi0"], 1, Fout_p)
    wi1 = pad2(params["wi1"], Fout_p, Fout_p)
    bi1 = pad2(params["bi1"], 1, Fout_p)

    # ---- choose how many graphs per grid step ----
    # double-buffered feat/adj/out blocks per graph:
    per_graph_bytes = 4 * (N_p * Fin_p + N_p * N_p + N_p * Fout_p) * 2
    bt = int(max(1, min(B, vmem_block_budget // per_graph_bytes)))
    # keep at least 2 grid steps when possible so v7x's 2 TensorCores both work
    bt = int(min(bt, max(1, (B + 1) // 2)))
    B_p = _round_up(B, bt)
    if B_p != B:
        feat_p = jnp.pad(feat_p, ((0, B_p - B), (0, 0), (0, 0)))
        adj_p = jnp.pad(adj_p, ((0, B_p - B), (0, 0), (0, 0)))
    grid = (B_p // bt,)

    param_list = [W, a1, a2, a12, we1, be1, we2, be2, wi0a, wi0b, bi0, wi1, bi1]

    def const_spec(p):
        nd = p.ndim
        return pl.BlockSpec(p.shape, lambda b, _nd=nd: (0,) * _nd)

    in_specs = ([pl.BlockSpec((bt, N_p, Fin_p), lambda b: (b, 0, 0)),
                 pl.BlockSpec((bt, N_p, N_p), lambda b: (b, 0, 0))]
                + [const_spec(p) for p in param_list])
    out_specs = pl.BlockSpec((bt, N_p, Fout_p), lambda b: (b, 0, 0))

    kernel = functools.partial(mlp_gat_kernel, alpha=alpha,
                               n_real=N, apply_elu=apply_elu)

    out = pl.pallas_call(
        kernel,
        out_shape=jax.ShapeDtypeStruct((B_p, N_p, Fout_p), jnp.float32),
        grid_spec=pltpu.PrefetchScalarGridSpec(
            num_scalar_prefetch=0,
            grid=grid,
            in_specs=in_specs,
            out_specs=out_specs,
        ),
        compiler_params=pltpu.CompilerParams(
            dimension_semantics=("parallel",),
            vmem_limit_bytes=64 * 1024 * 1024),
    )(feat_p, adj_p, *param_list)

    return out[:B, :N, :Fout]


def _xavier_uniform(key, shape, gain=1.414):
    fan_in, fan_out = shape[0], shape[-1]
    bound = gain * math.sqrt(6.0 / (fan_in + fan_out))
    return jax.random.uniform(key, shape, jnp.float32, -bound, bound)


def init_params(key, in_features, out_features):
    E = int(math.sqrt(in_features))
    ks = jax.random.split(key, 12)
    # nn.Linear weights are (out, in) in torch; we pass the transposed (in, out)
    # layout so the kernel does x @ W_T + b.
    return {
        "W":   _xavier_uniform(ks[0], (in_features, out_features)),
        "a1":  _xavier_uniform(ks[1], (out_features, 1)).reshape(1, out_features),
        "a2":  _xavier_uniform(ks[2], (out_features, 1)).reshape(1, out_features),
        "a12": _xavier_uniform(ks[3], (out_features, out_features)),
        "we1": _xavier_uniform(ks[4], (in_features, E), gain=1.0),
        "be1": jax.random.uniform(ks[5], (1, E), jnp.float32, -0.1, 0.1),
        "we2": _xavier_uniform(ks[6], (in_features, E), gain=1.0),
        "be2": jax.random.uniform(ks[7], (1, E), jnp.float32, -0.1, 0.1),
        "wi0": _xavier_uniform(ks[8], (2 * E, out_features), gain=1.0),
        "bi0": jax.random.uniform(ks[9], (1, out_features), jnp.float32, -0.1, 0.1),
        "wi1": _xavier_uniform(ks[10], (out_features, out_features), gain=1.0),
        "bi1": jax.random.uniform(ks[11], (1, out_features), jnp.float32, -0.1, 0.1),
    }


if __name__ == "__main__":
    B, N, Fin, Fout = 2, 8, 16, 32
    alpha = 0.2

    key = jax.random.PRNGKey(0)
    k_feat, k_adj, k_params = jax.random.split(key, 3)

    feat = jax.random.normal(k_feat, (B, N, Fin), jnp.float32)
    # random 0/1 adjacency with self-loops
    adj = (jax.random.uniform(k_adj, (B, N, N)) > 0.5).astype(jnp.float32)
    adj = jnp.maximum(adj, jnp.eye(N, dtype=jnp.float32)[None])

    params = init_params(k_params, Fin, Fout)

    out = mlp_graph_attention(feat, adj, params, alpha=alpha, apply_elu=True)
    out = jax.block_until_ready(out)
    assert out.shape == (B, N, Fout)
    assert bool(jnp.all(jnp.isfinite(out)))
    print("KERNEL_OK")
</pallas_src>

<mosaic_0001>
module attributes {stable_mosaic.version = 11 : i64} {
  func.func @mlp_gat_kernel(%arg0: i32, %arg1: memref<1x128x128xf32, #tpu.memory_space<vmem>>, %arg2: memref<1x128x128xf32, #tpu.memory_space<vmem>>, %arg3: memref<128x128xf32, #tpu.memory_space<vmem>>, %arg4: memref<1x128xf32, #tpu.memory_space<vmem>>, %arg5: memref<1x128xf32, #tpu.memory_space<vmem>>, %arg6: memref<128x128xf32, #tpu.memory_space<vmem>>, %arg7: memref<128x128xf32, #tpu.memory_space<vmem>>, %arg8: memref<1x128xf32, #tpu.memory_space<vmem>>, %arg9: memref<128x128xf32, #tpu.memory_space<vmem>>, %arg10: memref<1x128xf32, #tpu.memory_space<vmem>>, %arg11: memref<128x128xf32, #tpu.memory_space<vmem>>, %arg12: memref<128x128xf32, #tpu.memory_space<vmem>>, %arg13: memref<1x128xf32, #tpu.memory_space<vmem>>, %arg14: memref<128x128xf32, #tpu.memory_space<vmem>>, %arg15: memref<1x128xf32, #tpu.memory_space<vmem>>, %arg16: memref<1x128x128xf32, #tpu.memory_space<vmem>>) attributes {dimension_semantics = [#tpu.dimension_semantics<parallel>], iteration_bounds = array<i64: 2>, scalar_prefetch = 0 : i64, scratch_operands = 0 : i64, tpu.core_type = #tpu.core_type<tc>, window_params = [{transform_indices = @transform_0, window_bounds = array<i64: 1, 128, 128>}, {transform_indices = @transform_1, window_bounds = array<i64: 1, 128, 128>}, {pipeline_mode = #tpu.pipeline_mode<synchronous>, transform_indices = @transform_2, window_bounds = array<i64: 128, 128>}, {pipeline_mode = #tpu.pipeline_mode<synchronous>, transform_indices = @transform_3, window_bounds = array<i64: 1, 128>}, {pipeline_mode = #tpu.pipeline_mode<synchronous>, transform_indices = @transform_4, window_bounds = array<i64: 1, 128>}, {pipeline_mode = #tpu.pipeline_mode<synchronous>, transform_indices = @transform_5, window_bounds = array<i64: 128, 128>}, {pipeline_mode = #tpu.pipeline_mode<synchronous>, transform_indices = @transform_6, window_bounds = array<i64: 128, 128>}, {pipeline_mode = #tpu.pipeline_mode<synchronous>, transform_indices = @transform_7, window_bounds = array<i64: 1, 128>}, {pipeline_mode = #tpu.pipeline_mode<synchronous>, transform_indices = @transform_8, window_bounds = array<i64: 128, 128>}, {pipeline_mode = #tpu.pipeline_mode<synchronous>, transform_indices = @transform_9, window_bounds = array<i64: 1, 128>}, {pipeline_mode = #tpu.pipeline_mode<synchronous>, transform_indices = @transform_10, window_bounds = array<i64: 128, 128>}, {pipeline_mode = #tpu.pipeline_mode<synchronous>, transform_indices = @transform_11, window_bounds = array<i64: 128, 128>}, {pipeline_mode = #tpu.pipeline_mode<synchronous>, transform_indices = @transform_12, window_bounds = array<i64: 1, 128>}, {pipeline_mode = #tpu.pipeline_mode<synchronous>, transform_indices = @transform_13, window_bounds = array<i64: 128, 128>}, {pipeline_mode = #tpu.pipeline_mode<synchronous>, transform_indices = @transform_14, window_bounds = array<i64: 1, 128>}, {transform_indices = @transform_15, window_bounds = array<i64: 1, 128, 128>}]} {
    %c0 = arith.constant 0 : index
    %c0_0 = arith.constant 0 : index
    %c0_1 = arith.constant 0 : index
    %0 = vector.load %arg1[%c0, %c0_0, %c0_1] : memref<1x128x128xf32, #tpu.memory_space<vmem>>, vector<1x128x128xf32>
    %c0_2 = arith.constant 0 : index
    %c0_3 = arith.constant 0 : index
    %c0_4 = arith.constant 0 : index
    %1 = vector.load %arg2[%c0_2, %c0_3, %c0_4] : memref<1x128x128xf32, #tpu.memory_space<vmem>>, vector<1x128x128xf32>
    %2 = arith.truncf %0 : vector<1x128x128xf32> to vector<1x128x128xbf16>
    %3 = vector.shape_cast %2 : vector<1x128x128xbf16> to vector<128x128xbf16>
    %c0_5 = arith.constant 0 : index
    %c0_6 = arith.constant 0 : index
    %4 = vector.load %arg3[%c0_5, %c0_6] : memref<128x128xf32, #tpu.memory_space<vmem>>, vector<128x128xf32>
    %5 = arith.truncf %4 : vector<128x128xf32> to vector<128x128xbf16>
    %cst = arith.constant dense<0.000000e+00> : vector<128x128xf32>
    %6 = tpu.matmul %3, %5, %cst {dimension_numbers = #tpu.dot_dimension_numbers<[1], [0], [0], [1], [0, 0, 1, 1], [], []>} : vector<128x128xbf16>, vector<128x128xbf16>, vector<128x128xf32> -> vector<128x128xf32>
    %7 = vector.shape_cast %6 : vector<128x128xf32> to vector<1x128x128xf32>
    %8 = arith.truncf %6 : vector<128x128xf32> to vector<128x128xbf16>
    %9 = vector.shape_cast %8 : vector<128x128xbf16> to vector<1x128x128xbf16>
    %c0_7 = arith.constant 0 : index
    %c0_8 = arith.constant 0 : index
    %10 = vector.load %arg5[%c0_7, %c0_8] : memref<1x128xf32, #tpu.memory_space<vmem>>, vector<1x128xf32>
    %11 = vector.shape_cast %10 : vector<1x128xf32> to vector<1x1x128xf32>
    %12 = vector.broadcast %11 : vector<1x1x128xf32> to vector<1x128x128xf32>
    %13 = arith.mulf %7, %12 : vector<1x128x128xf32>
    %cst_9 = arith.constant dense<0.000000e+00> : vector<1x128xf32>
    %14 = vector.multi_reduction <add>, %13, %cst_9 [2] : vector<1x128x128xf32> to vector<1x128xf32>
    %15 = vector.shape_cast %14 : vector<1x128xf32> to vector<1x128x1xf32>
    %c0_10 = arith.constant 0 : index
    %c0_11 = arith.constant 0 : index
    %16 = vector.load %arg6[%c0_10, %c0_11] : memref<128x128xf32, #tpu.memory_space<vmem>>, vector<128x128xf32>
    %17 = arith.truncf %16 : vector<128x128xf32> to vector<128x128xbf16>
    %cst_12 = arith.constant dense<0.000000e+00> : vector<128x128xf32>
    %18 = tpu.matmul %8, %17, %cst_12 {dimension_numbers = #tpu.dot_dimension_numbers<[1], [0], [0], [1], [0, 0, 1, 1], [], []>} : vector<128x128xbf16>, vector<128x128xbf16>, vector<128x128xf32> -> vector<128x128xf32>
    %19 = vector.shape_cast %18 : vector<128x128xf32> to vector<1x128x128xf32>
    %c0_13 = arith.constant 0 : index
    %c0_14 = arith.constant 0 : index
    %20 = vector.load %arg4[%c0_13, %c0_14] : memref<1x128xf32, #tpu.memory_space<vmem>>, vector<1x128xf32>
    %21 = vector.shape_cast %20 : vector<1x128xf32> to vector<1x1x128xf32>
    %22 = vector.broadcast %21 : vector<1x1x128xf32> to vector<1x128x128xf32>
    %23 = arith.addf %19, %22 : vector<1x128x128xf32>
    %24 = arith.truncf %23 : vector<1x128x128xf32> to vector<1x128x128xbf16>
    "tpu.trace_start"() <{level = 10 : i32, message = "bnp,bmp->bnm"}> : () -> ()
    %cst_15 = arith.constant dense<0.000000e+00> : vector<1x128x128xf32>
    %25 = tpu.matmul %24, %9, %cst_15 {dimension_numbers = #tpu.dot_dimension_numbers<[2], [2], [1], [1], [0, 0, 0, 1, 1, 1], [0], [0]>} : vector<1x128x128xbf16>, vector<1x128x128xbf16>, vector<1x128x128xf32> -> vector<1x128x128xf32>
    "tpu.trace_stop"() : () -> ()
    %26 = vector.broadcast %15 : vector<1x128x1xf32> to vector<1x128x128xf32>
    %27 = arith.addf %25, %26 : vector<1x128x128xf32>
    %cst_16 = arith.constant 0.000000e+00 : f32
    %28 = vector.broadcast %cst_16 : f32 to vector<1x128x128xf32>
    %29 = arith.cmpf ogt, %27, %28 : vector<1x128x128xf32>
    %cst_17 = arith.constant 2.000000e-01 : f32
    %30 = vector.broadcast %cst_17 : f32 to vector<1x128x128xf32>
    %31 = arith.mulf %30, %27 : vector<1x128x128xf32>
    %32 = arith.select %29, %27, %31 : vector<1x128x128xi1>, vector<1x128x128xf32>
    %cst_18 = arith.constant 0.000000e+00 : f32
    %33 = vector.broadcast %cst_18 : f32 to vector<1x128x128xf32>
    %34 = arith.cmpf ogt, %1, %33 : vector<1x128x128xf32>
    %cst_19 = arith.constant -9.000000e+15 : f32
    %35 = vector.broadcast %cst_19 : f32 to vector<1x128x128xf32>
    %36 = arith.select %34, %32, %35 : vector<1x128x128xi1>, vector<1x128x128xf32>
    %37 = tpu.iota {dimensions = array<i32: 2>} : vector<1x128x128xi32>
    %c8_i32 = arith.constant 8 : i32
    %38 = vector.broadcast %c8_i32 : i32 to vector<1x128x128xi32>
    %39 = arith.cmpi slt, %37, %38 : vector<1x128x128xi32>
    %cst_20 = arith.constant 0xFF800000 : f32
    %40 = vector.broadcast %cst_20 : f32 to vector<1x128x128xf32>
    %41 = arith.select %39, %36, %40 : vector<1x128x128xi1>, vector<1x128x128xf32>
    %cst_21 = arith.constant dense<0xFF800000> : vector<1x128xf32>
    %42 = vector.multi_reduction <maximumf>, %41, %cst_21 [2] : vector<1x128x128xf32> to vector<1x128xf32>
    %43 = vector.shape_cast %42 : vector<1x128xf32> to vector<1x128x1xf32>
    %44 = vector.broadcast %43 : vector<1x128x1xf32> to vector<1x128x128xf32>
    %45 = arith.subf %41, %44 : vector<1x128x128xf32>
    %46 = math.exp %45 : vector<1x128x128xf32>
    %cst_22 = arith.constant dense<0.000000e+00> : vector<1x128xf32>
    %47 = vector.multi_reduction <add>, %46, %cst_22 [2] : vector<1x128x128xf32> to vector<1x128xf32>
    %48 = vector.shape_cast %47 : vector<1x128xf32> to vector<1x128x1xf32>
    %49 = tpu.reciprocal %48 {approx = true} : vector<1x128x1xf32> -> vector<1x128x1xf32>
    %50 = vector.broadcast %49 : vector<1x128x1xf32> to vector<1x128x128xf32>
    %51 = arith.mulf %46, %50 : vector<1x128x128xf32>
    %52 = arith.truncf %51 : vector<1x128x128xf32> to vector<1x128x128xbf16>
    "tpu.trace_start"() <{level = 10 : i32, message = "bnm,bmf->bnf"}> : () -> ()
    %cst_23 = arith.constant dense<0.000000e+00> : vector<1x128x128xf32>
    %53 = tpu.matmul %52, %2, %cst_23 {dimension_numbers = #tpu.dot_dimension_numbers<[2], [1], [1], [2], [0, 0, 0, 1, 1, 2], [0], [0]>} : vector<1x128x128xbf16>, vector<1x128x128xbf16>, vector<1x128x128xf32> -> vector<1x128x128xf32>
    "tpu.trace_stop"() : () -> ()
    %54 = arith.truncf %53 : vector<1x128x128xf32> to vector<1x128x128xbf16>
    %55 = vector.shape_cast %54 : vector<1x128x128xbf16> to vector<128x128xbf16>
    %c0_24 = arith.constant 0 : index
    %c0_25 = arith.constant 0 : index
    %56 = vector.load %arg7[%c0_24, %c0_25] : memref<128x128xf32, #tpu.memory_space<vmem>>, vector<128x128xf32>
    %57 = arith.truncf %56 : vector<128x128xf32> to vector<128x128xbf16>
    %cst_26 = arith.constant dense<0.000000e+00> : vector<128x128xf32>
    %58 = tpu.matmul %3, %57, %cst_26 {dimension_numbers = #tpu.dot_dimension_numbers<[1], [0], [0], [1], [0, 0, 1, 1], [], []>} : vector<128x128xbf16>, vector<128x128xbf16>, vector<128x128xf32> -> vector<128x128xf32>
    %c0_27 = arith.constant 0 : index
    %c0_28 = arith.constant 0 : index
    %59 = vector.load %arg8[%c0_27, %c0_28] : memref<1x128xf32, #tpu.memory_space<vmem>>, vector<1x128xf32>
    %60 = vector.broadcast %59 : vector<1x128xf32> to vector<128x128xf32>
    %61 = arith.addf %58, %60 : vector<128x128xf32>
    %cst_29 = arith.constant 0.000000e+00 : f32
    %62 = vector.broadcast %cst_29 : f32 to vector<128x128xf32>
    %63 = arith.cmpf ogt, %61, %62 : vector<128x128xf32>
    %cst_30 = arith.constant 2.000000e-01 : f32
    %64 = vector.broadcast %cst_30 : f32 to vector<128x128xf32>
    %65 = arith.mulf %64, %61 : vector<128x128xf32>
    %66 = arith.select %63, %61, %65 : vector<128x128xi1>, vector<128x128xf32>
    %c0_31 = arith.constant 0 : index
    %c0_32 = arith.constant 0 : index
    %67 = vector.load %arg9[%c0_31, %c0_32] : memref<128x128xf32, #tpu.memory_space<vmem>>, vector<128x128xf32>
    %68 = arith.truncf %67 : vector<128x128xf32> to vector<128x128xbf16>
    %cst_33 = arith.constant dense<0.000000e+00> : vector<128x128xf32>
    %69 = tpu.matmul %55, %68, %cst_33 {dimension_numbers = #tpu.dot_dimension_numbers<[1], [0], [0], [1], [0, 0, 1, 1], [], []>} : vector<128x128xbf16>, vector<128x128xbf16>, vector<128x128xf32> -> vector<128x128xf32>
    %c0_34 = arith.constant 0 : index
    %c0_35 = arith.constant 0 : index
    %70 = vector.load %arg10[%c0_34, %c0_35] : memref<1x128xf32, #tpu.memory_space<vmem>>, vector<1x128xf32>
    %71 = vector.broadcast %70 : vector<1x128xf32> to vector<128x128xf32>
    %72 = arith.addf %69, %71 : vector<128x128xf32>
    %cst_36 = arith.constant 0.000000e+00 : f32
    %73 = vector.broadcast %cst_36 : f32 to vector<128x128xf32>
    %74 = arith.cmpf ogt, %72, %73 : vector<128x128xf32>
    %cst_37 = arith.constant 2.000000e-01 : f32
    %75 = vector.broadcast %cst_37 : f32 to vector<128x128xf32>
    %76 = arith.mulf %75, %72 : vector<128x128xf32>
    %77 = arith.select %74, %72, %76 : vector<128x128xi1>, vector<128x128xf32>
    %78 = arith.truncf %66 : vector<128x128xf32> to vector<128x128xbf16>
    %c0_38 = arith.constant 0 : index
    %c0_39 = arith.constant 0 : index
    %79 = vector.load %arg11[%c0_38, %c0_39] : memref<128x128xf32, #tpu.memory_space<vmem>>, vector<128x128xf32>
    %80 = arith.truncf %79 : vector<128x128xf32> to vector<128x128xbf16>
    %cst_40 = arith.constant dense<0.000000e+00> : vector<128x128xf32>
    %81 = tpu.matmul %78, %80, %cst_40 {dimension_numbers = #tpu.dot_dimension_numbers<[1], [0], [0], [1], [0, 0, 1, 1], [], []>} : vector<128x128xbf16>, vector<128x128xbf16>, vector<128x128xf32> -> vector<128x128xf32>
    %82 = arith.truncf %77 : vector<128x128xf32> to vector<128x128xbf16>
    %c0_41 = arith.constant 0 : index
    %c0_42 = arith.constant 0 : index
    %83 = vector.load %arg12[%c0_41, %c0_42] : memref<128x128xf32, #tpu.memory_space<vmem>>, vector<128x128xf32>
    %84 = arith.truncf %83 : vector<128x128xf32> to vector<128x128xbf16>
    %cst_43 = arith.constant dense<0.000000e+00> : vector<128x128xf32>
    %85 = tpu.matmul %82, %84, %cst_43 {dimension_numbers = #tpu.dot_dimension_numbers<[1], [0], [0], [1], [0, 0, 1, 1], [], []>} : vector<128x128xbf16>, vector<128x128xbf16>, vector<128x128xf32> -> vector<128x128xf32>
    %86 = arith.addf %81, %85 : vector<128x128xf32>
    %c0_44 = arith.constant 0 : index
    %c0_45 = arith.constant 0 : index
    %87 = vector.load %arg13[%c0_44, %c0_45] : memref<1x128xf32, #tpu.memory_space<vmem>>, vector<1x128xf32>
    %88 = vector.broadcast %87 : vector<1x128xf32> to vector<128x128xf32>
    %89 = arith.addf %86, %88 : vector<128x128xf32>
    %cst_46 = arith.constant 0.000000e+00 : f32
    %90 = vector.broadcast %cst_46 : f32 to vector<128x128xf32>
    %91 = arith.cmpf ogt, %89, %90 : vector<128x128xf32>
    %cst_47 = arith.constant 2.000000e-01 : f32
    %92 = vector.broadcast %cst_47 : f32 to vector<128x128xf32>
    %93 = arith.mulf %92, %89 : vector<128x128xf32>
    %94 = arith.select %91, %89, %93 : vector<128x128xi1>, vector<128x128xf32>
    %95 = arith.truncf %94 : vector<128x128xf32> to vector<128x128xbf16>
    %c0_48 = arith.constant 0 : index
    %c0_49 = arith.constant 0 : index
    %96 = vector.load %arg14[%c0_48, %c0_49] : memref<128x128xf32, #tpu.memory_space<vmem>>, vector<128x128xf32>
    %97 = arith.truncf %96 : vector<128x128xf32> to vector<128x128xbf16>
    %cst_50 = arith.constant dense<0.000000e+00> : vector<128x128xf32>
    %98 = tpu.matmul %95, %97, %cst_50 {dimension_numbers = #tpu.dot_dimension_numbers<[1], [0], [0], [1], [0, 0, 1, 1], [], []>} : vector<128x128xbf16>, vector<128x128xbf16>, vector<128x128xf32> -> vector<128x128xf32>
    %c0_51 = arith.constant 0 : index
    %c0_52 = arith.constant 0 : index
    %99 = vector.load %arg15[%c0_51, %c0_52] : memref<1x128xf32, #tpu.memory_space<vmem>>, vector<1x128xf32>
    %100 = vector.broadcast %99 : vector<1x128xf32> to vector<128x128xf32>
    %101 = arith.addf %98, %100 : vector<128x128xf32>
    %cst_53 = arith.constant 0.000000e+00 : f32
    %102 = vector.broadcast %cst_53 : f32 to vector<128x128xf32>
    %103 = arith.cmpf ogt, %101, %102 : vector<128x128xf32>
    %cst_54 = arith.constant 2.000000e-01 : f32
    %104 = vector.broadcast %cst_54 : f32 to vector<128x128xf32>
    %105 = arith.mulf %104, %101 : vector<128x128xf32>
    %106 = arith.select %103, %101, %105 : vector<128x128xi1>, vector<128x128xf32>
    %cst_55 = arith.constant 0.000000e+00 : f32
    %107 = vector.broadcast %cst_55 : f32 to vector<128x128xf32>
    %108 = arith.cmpf ogt, %106, %107 : vector<128x128xf32>
    %cst_56 = arith.constant 0.000000e+00 : f32
    %109 = vector.broadcast %cst_56 : f32 to vector<128x128xf32>
    %110 = arith.minimumf %106, %109 : vector<128x128xf32>
    %111 = math.exp %110 : vector<128x128xf32>
    %cst_57 = arith.constant 1.000000e+00 : f32
    %112 = vector.broadcast %cst_57 : f32 to vector<128x128xf32>
    %113 = arith.subf %111, %112 : vector<128x128xf32>
    %114 = arith.select %108, %106, %113 : vector<128x128xi1>, vector<128x128xf32>
    %115 = vector.shape_cast %114 : vector<128x128xf32> to vector<1x128x128xf32>
    %c0_58 = arith.constant 0 : index
    %c0_59 = arith.constant 0 : index
    %c0_60 = arith.constant 0 : index
    %116 = vector.load %arg16[%c0_58, %c0_59, %c0_60] : memref<1x128x128xf32, #tpu.memory_space<vmem>>, vector<1x128x128xf32>
    tpu.vector_store %arg16[%c0_58, %c0_59, %c0_60], %115 {strides = array<i32>} : memref<1x128x128xf32, #tpu.memory_space<vmem>>, vector<1x128x128xf32>,
    return
  }
  func.func @transform_0(%arg0: i32) -> (i32, i32, i32) {
    %c0_i32 = arith.constant 0 : i32
    %c0_i32_0 = arith.constant 0 : i32
    %c0_i32_1 = arith.constant 0 : i32
    return %arg0, %c0_i32, %c0_i32_0 : i32, i32, i32
  }
  func.func @transform_1(%arg0: i32) -> (i32, i32, i32) {
    %c0_i32 = arith.constant 0 : i32
    %c0_i32_0 = arith.constant 0 : i32
    %c0_i32_1 = arith.constant 0 : i32
    return %arg0, %c0_i32, %c0_i32_0 : i32, i32, i32
  }
  func.func @transform_2(%arg0: i32) -> (i32, i32) {
    %c0_i32 = arith.constant 0 : i32
    %c0_i32_0 = arith.constant 0 : i32
    %c0_i32_1 = arith.constant 0 : i32
    return %c0_i32, %c0_i32_0 : i32, i32
  }
  func.func @transform_3(%arg0: i32) -> (i32, i32) {
    %c0_i32 = arith.constant 0 : i32
    %c0_i32_0 = arith.constant 0 : i32
    %c0_i32_1 = arith.constant 0 : i32
    return %c0_i32, %c0_i32_0 : i32, i32
  }
  func.func @transform_4(%arg0: i32) -> (i32, i32) {
    %c0_i32 = arith.constant 0 : i32
    %c0_i32_0 = arith.constant 0 : i32
    %c0_i32_1 = arith.constant 0 : i32
    return %c0_i32, %c0_i32_0 : i32, i32
  }
  func.func @transform_5(%arg0: i32) -> (i32, i32) {
    %c0_i32 = arith.constant 0 : i32
    %c0_i32_0 = arith.constant 0 : i32
    %c0_i32_1 = arith.constant 0 : i32
    return %c0_i32, %c0_i32_0 : i32, i32
  }
  func.func @transform_6(%arg0: i32) -> (i32, i32) {
    %c0_i32 = arith.constant 0 : i32
    %c0_i32_0 = arith.constant 0 : i32
    %c0_i32_1 = arith.constant 0 : i32
    return %c0_i32, %c0_i32_0 : i32, i32
  }
  func.func @transform_7(%arg0: i32) -> (i32, i32) {
    %c0_i32 = arith.constant 0 : i32
    %c0_i32_0 = arith.constant 0 : i32
    %c0_i32_1 = arith.constant 0 : i32
    return %c0_i32, %c0_i32_0 : i32, i32
  }
  func.func @transform_8(%arg0: i32) -> (i32, i32) {
    %c0_i32 = arith.constant 0 : i32
    %c0_i32_0 = arith.constant 0 : i32
    %c0_i32_1 = arith.constant 0 : i32
    return %c0_i32, %c0_i32_0 : i32, i32
  }
  func.func @transform_9(%arg0: i32) -> (i32, i32) {
    %c0_i32 = arith.constant 0 : i32
    %c0_i32_0 = arith.constant 0 : i32
    %c0_i32_1 = arith.constant 0 : i32
    return %c0_i32, %c0_i32_0 : i32, i32
  }
  func.func @transform_10(%arg0: i32) -> (i32, i32) {
    %c0_i32 = arith.constant 0 : i32
    %c0_i32_0 = arith.constant 0 : i32
    %c0_i32_1 = arith.constant 0 : i32
    return %c0_i32, %c0_i32_0 : i32, i32
  }
  func.func @transform_11(%arg0: i32) -> (i32, i32) {
    %c0_i32 = arith.constant 0 : i32
    %c0_i32_0 = arith.constant 0 : i32
    %c0_i32_1 = arith.constant 0 : i32
    return %c0_i32, %c0_i32_0 : i32, i32
  }
  func.func @transform_12(%arg0: i32) -> (i32, i32) {
    %c0_i32 = arith.constant 0 : i32
    %c0_i32_0 = arith.constant 0 : i32
    %c0_i32_1 = arith.constant 0 : i32
    return %c0_i32, %c0_i32_0 : i32, i32
  }
  func.func @transform_13(%arg0: i32) -> (i32, i32) {
    %c0_i32 = arith.constant 0 : i32
    %c0_i32_0 = arith.constant 0 : i32
    %c0_i32_1 = arith.constant 0 : i32
    return %c0_i32, %c0_i32_0 : i32, i32
  }
  func.func @transform_14(%arg0: i32) -> (i32, i32) {
    %c0_i32 = arith.constant 0 : i32
    %c0_i32_0 = arith.constant 0 : i32
    %c0_i32_1 = arith.constant 0 : i32
    return %c0_i32, %c0_i32_0 : i32, i32
  }
  func.func @transform_15(%arg0: i32) -> (i32, i32, i32) {
    %c0_i32 = arith.constant 0 : i32
    %c0_i32_0 = arith.constant 0 : i32
    %c0_i32_1 = arith.constant 0 : i32
    return %arg0, %c0_i32, %c0_i32_0 : i32, i32, i32
  }
}

</mosaic_0001>

<bundles_post_ra>
// kernel: tpu_custom_call.1
= control target key start
LH: loop header
LB: loop body
LE: loop exit
PB: predicated region body
PF: predicated region fallthrough
CT: control target
= control target key end

     0   :  { %s3912_s0 = inlined_call_operand.hbm [shape: f32[2,128,128], index: 0, kind: input, shape index: {}]   ;;  %s3913_s1 = inlined_call_operand.hbm [shape: f32[2,128,128], index: 1, kind: input, shape index: {}]   ;;  %s3914_s2 = inlined_call_operand.hbm [shape: f32[128,128], index: 2, kind: input, shape index: {}]   ;;  %s3915_s3 = inlined_call_operand.vmem [shape: f32[1,128], index: 3, kind: input, shape index: {}]   ;;  %s3916_s4 = inlined_call_operand.vmem [shape: f32[1,128], index: 4, kind: input, shape index: {}]   ;;  %s3917_s5 = inlined_call_operand.hbm [shape: f32[128,128], index: 5, kind: input, shape index: {}]   ;;  %s3918_s6 = inlined_call_operand.hbm [shape: f32[128,128], index: 6, kind: input, shape index: {}]   ;;  %s3919_s7 = inlined_call_operand.vmem [shape: f32[1,128], index: 7, kind: input, shape index: {}]   ;;  %s3920_s8 = inlined_call_operand.hbm [shape: f32[128,128], index: 8, kind: input, shape index: {}]   ;;  %s3921_s9 = inlined_call_operand.vmem [shape: f32[1,128], index: 9, kind: input, shape index: {}]   ;;  %s3922_s10 = inlined_call_operand.hbm [shape: f32[128,128], index: 10, kind: input, shape index: {}]   ;;  %s3923_s11 = inlined_call_operand.hbm [shape: f32[128,128], index: 11, kind: input, shape index: {}]   ;;  %s3924_s12 = inlined_call_operand.vmem [shape: f32[1,128], index: 12, kind: input, shape index: {}]   ;;  %s3925_s13 = inlined_call_operand.hbm [shape: f32[128,128], index: 13, kind: input, shape index: {}]   ;;  %s3926_s14 = inlined_call_operand.vmem [shape: f32[1,128], index: 14, kind: input, shape index: {}]   ;;  %s3927_s15 = inlined_call_operand.hbm [shape: f32[2,128,128], index: 15, kind: output, shape index: {}]  }
   0x1   :  { %3934 = sst [smem:[#allocation27_spill]] %s3912_s0 }
   0x2   :  { %3935 = sst [smem:[#allocation28_spill]] %s3914_s2 }
   0x3   :  { %3936 = sst [smem:[#allocation29_spill]] %s3917_s5 }
   0x4   :  { %3937 = sst [smem:[#allocation30_spill]] %s3918_s6 }
   0x5   :  { %3938 = sst [smem:[#allocation31_spill]] %s3920_s8 }
   0x6   :  { %3939 = sst [smem:[#allocation32_spill]] %s3922_s10 }
   0x7   :  { %3940 = sst [smem:[#allocation33_spill]] %s3923_s11 }
   0x8   :  { %3941 = sst [smem:[#allocation34_spill]] %s3924_s12 }
   0x9   :  { %3942 = sst [smem:[#allocation35_spill]] %s3925_s13 }
   0xa   :  { %3943 = sst [smem:[#allocation36_spill]] %s3926_s14 }
   0xb   :  { %3944 = sst [smem:[#allocation37_spill]] %s3927_s15 }
   0xc   :  { %20 = vsyncpa [#allocation3], 0 }
   0xd   :  { %22 = vsyncpa [#allocation3 + $0x1], 0 }
   0xe   :  { %23 = vsyncpa [#allocation6], 0 }
   0xf   :  { %25 = vsyncpa [#allocation6 + $0x1], 0 }
  0x10   :  { %26 = vsyncpa [#allocation9], 0 }
  0x11   :  { %27 = vsyncpa [#allocation12], 0 }
  0x12   :  { %28 = vsyncpa [#allocation15], 0 }
  0x13   :  { %29 = vsyncpa [#allocation4], 0 }
  0x14   :  { %31 = vsyncpa [#allocation4 + $0x1], 0  ;;  %s3230_s18 = smov 0   ;;  %s3232_s19 = smov 0  }
  0x15   :  { %s3234_s20 = smov 0   ;;  %s3236_s21 = smov 0  }
  0x16 LB: > { %3945 = sst [smem:[#allocation25_spill]] %s3133_s20  ;;  %s3254_s25 = sadd.s32 4294967295, %s3137_s21   ;;  %s3137_s21 = sphi %s3236_s21, %s3973_s21   ;;  %s3133_s20 = sphi %s3234_s20, %s3972_s20   ;;  %s3129_s19 = sphi %s3232_s19, %s3971_s19   ;;  %s3125_s18 = sphi %s3230_s18, %s3970_s18  }
  0x17   : > { %s3946_s2 = sld [smem:[#allocation28_spill]]  ;;  %p2487_p0 = scmp.ge.s32.totalorder %s3137_s21, 1 }
  0x18   : > { %p58_p1 = scmp.eq.s32.totalorder %s3254_s25, 0  ;;  %p393_p2 = scmp.lt.s32.totalorder %s3137_s21, 3 }
  0x19   : > { %s3139_s27 = smov [#allocation7]   ;;  %s3948_s5 = sld [smem:[#allocation29_spill]] }
  0x1a   : > { %p3259_p3 = pnand %p2487_p0, %p393_p2  ;;  %s406_s28 = sshll.u32 %s3139_s27, 4  ;;  %s407_s28 = int_to_ptr.vmem [resolvable:$true] %s406_s28 }
  0x1b   : > { %s3950_s8 = sld [smem:[#allocation31_spill]]  ;;  %s3929_s14 = smov 128  }
  0x1c   : > { %p2587_p4 = pneg %p3259_p3  ;;  %s3931_s12 = smov 8  }
  0x1d   : > { %s404_s24 = sshll.u32 %s3946_s2, 4  ;;  %s3140_s2 = smov [#allocation8]   ;;  %s405_s24 = int_to_ptr.hbm [resolvable:$true] %s404_s24 }
  0x1e   : > { %p3271_p6 = pnand %p2587_p4, %p58_p1  ;;  %s426_s15 = sshll.u32 %s3140_s2, 4  ;;  %s427_s15 = int_to_ptr.vmem [resolvable:$true] %s426_s15 }
  0x1f   : > { %s424_s16 = sshll.u32 %s3948_s5, 4  ;;  %s3951_s11 = sld [smem:[#allocation33_spill]]  ;;  %s425_s16 = int_to_ptr.hbm [resolvable:$true] %s424_s16 }
  0x20   : > { %2590 = dma.hbm_to_vmem [thread:$0]  (!%p3271_p6), %s405_s24, 2048, %s407_s28, [#allocation6], %s3929_s14, %s3929_s14, %s3931_s12  }
  0x21   : > { %s455_s27 = sshll.u32 %s3950_s8, 4  ;;  %s3143_s2 = smov [#allocation11]   ;;  %s456_s27 = int_to_ptr.hbm [resolvable:$true] %s455_s27 }
  0x22   : > { %2593 = dma.hbm_to_vmem [thread:$0]  (!%p3271_p6), %s425_s16, 2048, %s427_s15, [#allocation9], %s3929_s14, %s3929_s14, %s3931_s12  }
  0x23   : > { %s457_s23 = sshll.u32 %s3143_s2, 4  ;;  %s3144_s24 = smov [#allocation14]   ;;  %s458_s23 = int_to_ptr.vmem [resolvable:$true] %s457_s23 }
  0x24   : > { %2599 = dma.hbm_to_vmem [thread:$0]  (!%p3271_p6), %s456_s27, 2048, %s458_s23, [#allocation12], %s3929_s14, %s3929_s14, %s3931_s12  }
  0x25   : > { %s486_s22 = sshll.u32 %s3951_s11, 4  ;;  %s488_s28 = sshll.u32 %s3144_s24, 4  ;;  %s487_s22 = int_to_ptr.hbm [resolvable:$true] %s486_s22  ;;  %s489_s28 = int_to_ptr.vmem [resolvable:$true] %s488_s28 }
  0x26   : > { %s3952_s6 = sld [smem:[#allocation30_spill]]  ;;  %s3145_s27 = smov [#allocation10]  }
  0x27   : > { %2605 = dma.hbm_to_vmem [thread:$0]  (!%p3271_p6), %s487_s22, 2048, %s489_s28, [#allocation15], %s3929_s14, %s3929_s14, %s3931_s12  }
  0x28   : > { %s3953_s10 = sld [smem:[#allocation32_spill]]  ;;  %s440_s2 = sshll.u32 %s3145_s27, 4  ;;  %s441_s2 = int_to_ptr.vmem [resolvable:$true] %s440_s2 }
  0x29   : > { %s3146_s5 = smov [#allocation13]   ;;  %s3954_s13 = sld [smem:[#allocation35_spill]] }
  0x2a   : > { %s474_s8 = sshll.u32 %s3146_s5, 4  ;;  %s3147_s28 = smov [#allocation16]   ;;  %s475_s8 = int_to_ptr.vmem [resolvable:$true] %s474_s8 }
  0x2b   : > { %s2486_s16 = sadd.s32 4294967294, %s3137_s21   ;;  %s3327_s29 = sadd.s32 1, %s3137_s21  }
  0x2c   : > { %s438_s15 = sshll.u32 %s3952_s6, 4  ;;  %s44_s27 = sadd.s32 1, %s3133_s20  ;;  %s439_s15 = int_to_ptr.hbm [resolvable:$true] %s438_s15 }
  0x2d   : > { %2596 = dma.hbm_to_vmem [thread:$0]  (!%p3271_p6), %s439_s15, 2048, %s441_s2, [#allocation9], %s3929_s14, %s3929_s14, %s3931_s12  }
  0x2e   : > { %s472_s30 = sshll.u32 %s3953_s10, 4  ;;  %s505_s15 = sshll.u32 %s3147_s28, 4  ;;  %s473_s30 = int_to_ptr.hbm [resolvable:$true] %s472_s30  ;;  %s506_s15 = int_to_ptr.vmem [resolvable:$true] %s505_s15 }
  0x2f   : > { %s503_s24 = sshll.u32 %s3954_s13, 4  ;;  %s41_s2 = ssub.s32 %s3137_s21, %s3327_s29  ;;  %s504_s24 = int_to_ptr.hbm [resolvable:$true] %s503_s24 }
  0x30   : > { %2602 = dma.hbm_to_vmem [thread:$0]  (!%p3271_p6), %s473_s30, 2048, %s475_s8, [#allocation12], %s3929_s14, %s3929_s14, %s3931_s12  }
  0x31   : > { %2608 = dma.hbm_to_vmem [thread:$0]  (!%p3271_p6), %s504_s24, 2048, %s506_s15, [#allocation15], %s3929_s14, %s3929_s14, %s3931_s12  }
  0x32   : > { %p51_p7 = scmp.ne.s32.totalorder %s3133_s20, %s3129_s19  ;;  %p42_p8 = scmp.eq.s32.totalorder %s41_s2, 0 }
  0x33   : > { %p52_p9 = scmp.eq.s32.totalorder %s3137_s21, 0  ;;  %p57_p10 = scmp.ne.s32.totalorder %s3129_s19, %s3125_s18 }
  0x34   : > { %p380_p11 = scmp.eq.s32.totalorder %s3254_s25, 1  ;;  %p386_p2 = scmp.eq.s32.totalorder %s2486_s16, 1 }
  0x35   : > { %s3339_s30 = scalar_select %p42_p8, %s3133_s20, %s44_s27  }
  0x36   : > { %p3341_p12 = por %p52_p9, %p51_p7  ;;  %p3347_p13 = por %p58_p1, %p57_p10 }
  0x37   : > { %3955 = sst [smem:[#allocation26_spill]] %s3339_s30  ;;  %p3351_p0 = por %p380_p11, %p51_p7 }
  0x38   : > { %p2627_p4 = scmp.lt.s32.totalorder %s3137_s21, 2  ;;  %s522_s22 = sand.u32 1, %s3133_s20  }
  0x39   : > { %p3357_p6 = por %p386_p2, %p57_p10  ;;  %s2496_s24 = sshll.u32 %s522_s22, 7 }
  0x3a   : > { %s2534_s28 = sshll.u32 %s3137_s21, 7  ;;  %s3960_s0 = sld [smem:[#allocation27_spill]] }
  0x3b   : > { %s526_s12 = scalar_lea.vmem [#allocation2], %s2496_s24  ;;  %p3367_p7 = pnand %p2627_p4, %p3341_p12 }
  0x3c   : > { %s534_s6 = sshll.u32 %s526_s12, 4  ;;  %s553_s13 = scalar_lea.hbm %s3913_s1, %s2534_s28  ;;  %s535_s6 = int_to_ptr.vmem [resolvable:$true] %s534_s6 }
  0x3d   : > { %s548_s30 = scalar_lea.vmem [#allocation5], %s2496_s24  ;;  %s554_s15 = sshll.u32 %s553_s13, 4  ;;  %s555_s15 = int_to_ptr.hbm [resolvable:$true] %s554_s15 }
  0x3e   : > { %s3374_s20 = sshll.u32 %s548_s30, 4  ;;  %s523_s27 = scalar_lea.sflag [#allocation3], %s522_s22  ;;  %s557_s20 = int_to_ptr.vmem [resolvable:$true] %s3374_s20 }
  0x3f   : > { %p2995_p9 = pneg %p3367_p7 }
  0x40   : > { %s531_s2 = scalar_lea.hbm %s3960_s0, %s2534_s28  ;;  %s2998_s11 = scalar_lea.hbm %s3960_s0, 256 }
  0x41   : > { %s532_s14 = sshll.u32 %s531_s2, 4  ;;  %s533_s14 = int_to_ptr.hbm [resolvable:$true] %s532_s14 }
  0x42   : > { %s2991_s2 = sshra.s32 %s533_s14, 4  ;;  %s2992_s2 = int_to_ptr.hbm [resolvable:$true] %s2991_s2 }
  0x43   : > { %s2993_s12 = scalar_lea.hbm %s2992_s2, 128  ;;  %p2999_p12 = scmp.lt.s32.totalorder %s2992_s2, %s3960_s0 }
  0x44   : > { %p2994_p8 = scmp.ne.s32.totalorder %s2992_s2, %s2993_s12  ;;  %p3000_p2 = scmp.lt.s32.totalorder %s2998_s11, %s2993_s12 }
  0x46   : > { %p2996_p10 = pnand %p2995_p9, %p2994_p8  ;;  %p3001_p4 = por %p3000_p2, %p2999_p12 }
  0x48   : > { %p2997_p11 = pneg %p2996_p10 }
  0x4a   : > { %p3002_p5 = pnand %p3001_p4, %p2997_p11 }
  0x4c   : > { %3005 = shalt.err (!%p3002_p5)
}
  0x4d   : > { %s3962_s13 = smov 8   ;;  %s3963_s30 = smov 128  }
  0x4e   : > { %2612 = dma.hbm_to_vmem [thread:$0]  (!%p3367_p7), %s533_s14, 2048, %s535_s6, %s523_s27, %s3963_s30, %s3963_s30, %s3962_s13  }
  0x4f   : > { %s544_s22 = sand.u32 1, %s3137_s21   ;;  %s3021_s10 = sshra.s32 %s555_s15, 4  ;;  %s3022_s10 = int_to_ptr.hbm [resolvable:$true] %s3021_s10 }
  0x50   : > { %s545_s17 = scalar_lea.sflag [#allocation6], %s544_s22  ;;  %s3023_s2 = scalar_lea.hbm %s3022_s10, 128 }
  0x51   : > { %p3024_p8 = scmp.ne.s32.totalorder %s3022_s10, %s3023_s2  ;;  %s3028_s28 = scalar_lea.hbm %s3913_s1, 256 }
  0x52   : > { %p3029_p11 = scmp.lt.s32.totalorder %s3022_s10, %s3913_s1  ;;  %p3030_p12 = scmp.lt.s32.totalorder %s3028_s28, %s3023_s2 }
  0x53   : > { %p3026_p5 = pnand %p3024_p8, %p2995_p9 }
  0x54   : > { %p3031_p2 = por %p3030_p12, %p3029_p11 }
  0x55   : > { %p3027_p10 = pneg %p3026_p5 }
  0x57   : > { %p3032_p4 = pnand %p3031_p2, %p3027_p10 }
  0x59   : > { %3035 = shalt.err (!%p3032_p4)
}
  0x5a   : > { %2615 = dma.hbm_to_vmem [thread:$0]  (!%p3367_p7), %s555_s15, 2048, %s557_s20, %s545_s17, %s3963_s30, %s3963_s30, %s3962_s13  }
  0x5b   : > { %568 = sbr.rel (%p3259_p3) target bundleno = 1684 (0x694), region = 80  ;;  %s3411_s6 = sand.u32 (!%p3259_p3), 1, %s3129_s19  }
  0x5c   : > { %s3414_s0 = sshll.u32 (!%p3259_p3), %s3411_s6, 7  ;;  %s571_s14 = scalar_lea.sflag (!%p3259_p3), [#allocation3], %s3411_s6 }
  0x5d   : > { %s3418_s27 = scalar_lea.vmem (!%p3259_p3), [#allocation2], %s3414_s0 }
  0x60   : > { %3096 = dma.done.wait (%p3347_p13), %s571_s14, 2048  }
  0x61   : > { %3098 = vsyncadd (%p3347_p13), %s571_s14, 4294965248  ;;  %s580_s20 = sand.u32 1, %s3254_s25   ;;  %s3426_s16 = scalar_lea.vmem [#allocation5], %s3414_s0 }
  0x62   : > { %s581_s26 = scalar_lea.sflag [#allocation6], %s580_s20 }
  0x63   : > { %3100 = dma.done.wait (%p3347_p13), %s581_s26, 2048  }
  0x64   : > { %3102 = vsyncadd (%p3347_p13), %s581_s26, 4294965248 }
  0x65   : > { %3104 = dma.done.wait (%p58_p1), [#allocation6], 2048  }
  0x66   : > { %3106 = vsyncadd (%p58_p1), [#allocation6], 4294965248 }
  0x67   : > { %3108 = dma.done.wait (%p58_p1), [#allocation9], 4096  }
  0x68   : > { %3110 = vsyncadd (%p58_p1), [#allocation9], 4294963200 }
  0x69   : > { %3112 = dma.done.wait (%p58_p1), [#allocation12], 4096  }
  0x6a   : > { %3114 = vsyncadd (%p58_p1), [#allocation12], 4294963200 }
  0x6b   : > { %3116 = dma.done.wait (%p58_p1), [#allocation15], 4096  }
  0x6c   : > { %3118 = vsyncadd (%p58_p1), [#allocation15], 4294963200  ;;  %v734_v0 = vld [vmem:[#allocation7 + $0x70] sm:$0xff]  ;;  %v735_v1 = vld [vmem:[#allocation7 + $0x78] sm:$0xff]  ;;  %s3964_s28 = sld [smem:[#allocation34_spill]]  ;;  %s3842_s20 = scalar_lea.vmem [#allocation17], %s3414_s0 }
  0x6d   : > { %v732_v2 = vld [vmem:[#allocation7 + $0x60] sm:$0xff]  ;;  %v743_v3 = vpack.c.bf16 %v735_v1, %v734_v0  ;;  %v733_v4 = vld [vmem:[#allocation7 + $0x68] sm:$0xff]  ;;  %v730_v6 = vld [vmem:[#allocation7 + $0x50] sm:$0xff]  ;;  %s2536_s0 = sshll.u32 %s3254_s25, 7  ;;  %s3966_s5 = sld [smem:[#allocation37_spill]] }
  0x6e   : > { %v742_v5 = vpack.c.bf16 %v733_v4, %v732_v2  ;;  %v731_v7 = vld [vmem:[#allocation7 + $0x58] sm:$0xff]  ;;  %v728_v8 = vld [vmem:[#allocation7 + $0x40] sm:$0xff]  ;;  %v729_v10 = vld [vmem:[#allocation7 + $0x48] sm:$0xff]  ;;  %s2321_s13 = sshll.u32 %s3842_s20, 4  ;;  %s2309_s25 = scalar_lea.sflag [#allocation4], %s3411_s6  ;;  %s2322_s13 = int_to_ptr.vmem [resolvable:$true] %s2321_s13 }
  0x6f   : > { %792 = vmatpush.bf16.msra.mxu0 %v743_v3  ;;  %2538 = vmatpush.bf16.msra.mxu3 %v743_v3  ;;  %v741_v9 = vpack.c.bf16 %v731_v7, %v730_v6  ;;  %v740_v11 = vpack.c.bf16 %v729_v10, %v728_v8  ;;  %v726_v12 = vld [vmem:[#allocation7 + $0x30] sm:$0xff]  ;;  %v727_v13 = vld [vmem:[#allocation7 + $0x38] sm:$0xff]  ;;  %v724_v15 = vld [vmem:[#allocation7 + $0x20] sm:$0xff] }
  0x70   : > { %2537 = vmatpush.bf16.msra.mxu1 %v743_v3  ;;  %v739_v14 = vpack.c.bf16 %v727_v13, %v726_v12  ;;  %v725_v16 = vld [vmem:[#allocation7 + $0x28] sm:$0xff]  ;;  %v672_v17 = vld [vmem:[%s3418_s27] sm:$0xff]  ;;  %v682_v20 = vld [vmem:[%s3418_s27 + $0x50] sm:$0xff] }
  0x71   : > { %v738_v18 = vpack.c.bf16 %v725_v16, %v724_v15  ;;  %v673_v19 = vld [vmem:[%s3418_s27 + $0x8] sm:$0xff]  ;;  %v683_v21 = vld [vmem:[%s3418_s27 + $0x58] sm:$0xff]  ;;  %v722_v22 = vld [vmem:[#allocation7 + $0x10] sm:$0xff]  ;;  %v704_v24 = vpack.c.bf16 %v672_v17, %v672_v17  ;;  %v714_v26 = vpack.c.bf16 %v682_v20, %v682_v20 }
  0x72   : > { %v723_v23 = vld [vmem:[#allocation7 + $0x18] sm:$0xff]  ;;  %v705_v25 = vpack.c.bf16 %v673_v19, %v673_v19  ;;  %v715_v27 = vpack.c.bf16 %v683_v21, %v683_v21  ;;  %v720_v29 = vld [vmem:[#allocation7] sm:$0xff]  ;;  %v721_v30 = vld [vmem:[#allocation7 + $0x8] sm:$0xff] }
  0x73   : > { %793 = vmatpush.bf16.msra.mxu0 %v742_v5  ;;  %2540 = vmatpush.bf16.msra.mxu3 %v742_v5  ;;  %v737_v28 = vpack.c.bf16 %v723_v23, %v722_v22  ;;  %v684_v31 = vld [vmem:[%s3418_s27 + $0x60] sm:$0xff]  ;;  %v685_v32 = vld [vmem:[%s3418_s27 + $0x68] sm:$0xff]  ;;  %v760_v33 = vunpack.c.l.b16 %v704_v24  ;;  %v770_v35 = vunpack.c.l.b16 %v714_v26  ;;  %v736_v37 = vpack.c.bf16 %v721_v30, %v720_v29  ;;  %v686_v38 = vld [vmem:[%s3418_s27 + $0x70] sm:$0xff]  ;;  %s2320_s15 = scalar_lea.hbm %s3966_s5, %s2536_s0  ;;  %s3071_s12 = scalar_lea.hbm %s3966_s5, 256 }
  0x74   : > { %2539 = vmatpush.bf16.msra.mxu1 %v742_v5  ;;  %v761_v34 = vunpack.c.l.b16 %v705_v25  ;;  %v771_v36 = vunpack.c.l.b16 %v715_v27  ;;  %v687_v39 = vld [vmem:[%s3418_s27 + $0x78] sm:$0xff]  ;;  %v716_v40 = vpack.c.bf16 %v684_v31, %v684_v31  ;;  %v717_v41 = vpack.c.bf16 %v685_v32, %v685_v32  ;;  %v674_v50 = vld [vmem:[%s3418_s27 + $0x10] sm:$0xff]  ;;  %v680_v55 = vld [vmem:[%s3418_s27 + $0x40] sm:$0xff]  ;;  %s2323_s30 = sshll.u32 %s2320_s15, 4  ;;  %s2324_s30 = int_to_ptr.hbm [resolvable:$true] %s2323_s30 }
  0x75   : > { %v718_v42 = vpack.c.bf16 %v686_v38, %v686_v38  ;;  %v719_v43 = vpack.c.bf16 %v687_v39, %v687_v39  ;;  %v675_v51 = vld [vmem:[%s3418_s27 + $0x18] sm:$0xff]  ;;  %v678_v53 = vld [vmem:[%s3418_s27 + $0x30] sm:$0xff]  ;;  %v681_v58 = vld [vmem:[%s3418_s27 + $0x48] sm:$0xff]  ;;  %v712_v3 = vpack.c.bf16 %v680_v55, %v680_v55  ;;  %v706_v5 = vpack.c.bf16 %v674_v50, %v674_v50  ;;  %s3065_s22 = sshra.s32 %s2324_s30, 4  ;;  %s3066_s22 = int_to_ptr.hbm [resolvable:$true] %s3065_s22 }
  0x76   : > { %v3456_v44 = vpack.c.b16 %v761_v34, %v760_v33  ;;  %v3458_v45 = vpack.c.b16 %v771_v36, %v770_v35  ;;  %v772_v48 = vunpack.c.l.b16 %v716_v40  ;;  %v773_v49 = vunpack.c.l.b16 %v717_v41  ;;  %v679_v54 = vld [vmem:[%s3418_s27 + $0x38] sm:$0xff]  ;;  %v923_v59 = vld [vmem:[#allocation8 + $0x70] sm:$0xff]  ;;  %v921_v63 = vld [vmem:[#allocation8 + $0x60] sm:$0xff]  ;;  %s3067_s17 = scalar_lea.hbm %s3066_s22, 128  ;;  %p3072_p7 = scmp.lt.s32.totalorder %s3066_s22, %s3966_s5 }
  0x77   : > { %794 = vmatpush.bf16.msra.mxu0 %v741_v9  ;;  %2542 = vmatpush.bf16.msra.mxu3 %v741_v9  ;;  %v774_v46 = vunpack.c.l.b16 %v718_v42  ;;  %v775_v47 = vunpack.c.l.b16 %v719_v43  ;;  %v710_v56 = vpack.c.bf16 %v678_v53, %v678_v53  ;;  %v711_v57 = vpack.c.bf16 %v679_v54, %v679_v54  ;;  %v924_v60 = vld [vmem:[#allocation8 + $0x78] sm:$0xff]  ;;  %v922_v0 = vld [vmem:[#allocation8 + $0x68] sm:$0xff]  ;;  %v676_v15 = vld [vmem:[%s3418_s27 + $0x20] sm:$0xff]  ;;  %p3068_p1 = scmp.ne.s32.totalorder %s3066_s22, %s3067_s17  ;;  %p3073_p9 = scmp.lt.s32.totalorder %s3071_s12, %s3067_s17 }
  0x78   : > { %2541 = vmatpush.bf16.msra.mxu1 %v741_v9  ;;  %v3471_v61 = vpack.c.b16 %v773_v49, %v772_v48  ;;  %v932_v62 = vpack.c.bf16 %v924_v60, %v923_v59  ;;  %v713_v4 = vpack.c.bf16 %v681_v58, %v681_v58  ;;  %v707_v6 = vpack.c.bf16 %v675_v51, %v675_v51  ;;  %v919_v9 = vld [vmem:[#allocation8 + $0x50] sm:$0xff]  ;;  %v920_v10 = vld [vmem:[#allocation8 + $0x58] sm:$0xff]  ;;  %v677_v16 = vld [vmem:[%s3418_s27 + $0x28] sm:$0xff]  ;;  %s3965_s27 = sld [smem:[#allocation36_spill]] }
  0x79   : > { %v3462_v52 = vpack.c.b16 %v775_v47, %v774_v46  ;;  %v766_v1 = vunpack.c.l.b16 %v710_v56  ;;  %v767_v2 = vunpack.c.l.b16 %v711_v57  ;;  %v931_v7 = vpack.c.bf16 %v922_v0, %v921_v63  ;;  %v918_v19 = vld [vmem:[#allocation8 + $0x48] sm:$0xff]  ;;  %v915_v25 = vld [vmem:[#allocation8 + $0x30] sm:$0xff]  ;;  %v916_v26 = vld [vmem:[#allocation8 + $0x38] sm:$0xff]  ;;  %p3069_p3 = pnand %p3068_p1, %p3351_p0  ;;  %p3074_p8 = por %p3073_p9, %p3072_p7 }
  0x7a   : > { %v769_v12 = vunpack.c.l.b16 %v713_v4  ;;  %v762_v13 = vunpack.c.l.b16 %v706_v5  ;;  %v930_v17 = vpack.c.bf16 %v920_v10, %v919_v9  ;;  %v708_v20 = vpack.c.bf16 %v676_v15, %v676_v15  ;;  %v913_v31 = vld [vmem:[#allocation8 + $0x20] sm:$0xff]  ;;  %v914_v32 = vld [vmem:[#allocation8 + $0x28] sm:$0xff]  ;;  %v911_v34 = vld [vmem:[#allocation8 + $0x10] sm:$0xff] }
  0x7b   : > { %795 = vmatpush.bf16.msra.mxu0 %v740_v11  ;;  %2544 = vmatpush.bf16.msra.mxu3 %v740_v11  ;;  %v3473_v8 = vpack.c.b16 %v767_v2, %v766_v1  ;;  %v709_v21 = vpack.c.bf16 %v677_v16, %v677_v16  ;;  %v928_v29 = vpack.c.bf16 %v916_v26, %v915_v25  ;;  %v912_v35 = vld [vmem:[#allocation8 + $0x18] sm:$0xff]  ;;  %v910_v38 = vld [vmem:[#allocation8 + $0x8] sm:$0xff]  ;;  %v3499_v40 = vld [vmem:[%s3916_s4] ss:$0 sm:$0xff]  ;;  %p3070_p13 = pneg %p3069_p3 }
  0x7c   : > { %2543 = vmatpush.bf16.msra.mxu1 %v740_v11  ;;  %v768_v11 = vunpack.c.l.b16 %v712_v3  ;;  %v764_v27 = vunpack.c.l.b16 %v708_v20  ;;  %v927_v33 = vpack.c.bf16 %v914_v32, %v913_v31  ;;  %v926_v36 = vpack.c.bf16 %v912_v35, %v911_v34 }
  0x7d   : > { %p3075_p5 = pnand %p3074_p8, %p3070_p13 }
  0x7e   : > { %v3480_v22 = vpack.c.b16 %v769_v12, %v768_v11 }
  0x7f   : > { %796 = vmatpush.bf16.msra.mxu0 %v739_v14  ;;  %2546 = vmatpush.bf16.msra.mxu3 %v739_v14 }
  0x80   : > { %2545 = vmatpush.bf16.msra.mxu1 %v739_v14  ;;  %v763_v14 = vunpack.c.l.b16 %v707_v6 }
  0x82   : > { %v3482_v23 = vpack.c.b16 %v763_v14, %v762_v13 }
  0x83   : > { %797 = vmatpush.bf16.msra.mxu0 %v738_v18  ;;  %2548 = vmatpush.bf16.msra.mxu3 %v738_v18 }
  0x84   : > { %2547 = vmatpush.bf16.msra.mxu1 %v738_v18  ;;  %v917_v18 = vld [vmem:[#allocation8 + $0x40] sm:$0xff] }
  0x85   : > { %v929_v24 = vpack.c.bf16 %v918_v19, %v917_v18 }
  0x87   : > { %798 = vmatpush.bf16.msra.mxu0 %v737_v28  ;;  %2550 = vmatpush.bf16.msra.mxu3 %v737_v28 }
  0x88   : > { %2549 = vmatpush.bf16.msra.mxu1 %v737_v28  ;;  %v765_v28 = vunpack.c.l.b16 %v709_v21 }
  0x8a   : > { %v3488_v30 = vpack.c.b16 %v765_v28, %v764_v27 }
  0x8b   : > { %799 = vmatpush.bf16.msra.mxu0 %v736_v37  ;;  %2552 = vmatpush.bf16.msra.mxu3 %v736_v37 }
  0x8c   : > { %2551 = vmatpush.bf16.msra.mxu1 %v736_v37  ;;  %v909_v37 = vld [vmem:[#allocation8] sm:$0xff] }
  0x8d   : > { %v925_v39 = vpack.c.bf16 %v910_v38, %v909_v37 }
  0x8e   : > { %800 = vmatmul.bf16.vlgmr.msra.gmra.mxu0 %v3456_v44  ;;  %825 = vmatmul.bf16.vlgmr.msra.gmra.mxu3 %v3458_v45 }
  0x8f   : > { %1470 = vmatpush.bf16.msrb.mxu3 %v3462_v52  ;;  %815 = vmatmul.bf16.vlgmr.msra.gmra.mxu1 %v3473_v8 }
  0x90   : > { %981 = vmatpush.bf16.msrb.mxu1 %v932_v62 }
  0x93   : > { %1471 = vmatpush.bf16.msrb.mxu3 %v3471_v61 }
  0x94   : > { %982 = vmatpush.bf16.msrb.mxu1 %v931_v7 }
  0x97   : > { %1472 = vmatpush.bf16.msrb.mxu3 %v3458_v45 }
  0x98   : > { %983 = vmatpush.bf16.msrb.mxu1 %v930_v17 }
  0x9b   : > { %1473 = vmatpush.bf16.msrb.mxu3 %v3480_v22 }
  0x9c   : > { %984 = vmatpush.bf16.msrb.mxu1 %v929_v24 }
  0x9e   : > { %805 = vmatmul.bf16.gmra.mxu0 %v3482_v23  ;;  %830 = vmatmul.bf16.gmra.mxu3 %v3471_v61 }
  0x9f   : > { %1474 = vmatpush.bf16.msrb.mxu3 %v3473_v8  ;;  %820 = vmatmul.bf16.gmra.mxu1 %v3480_v22 }
  0xa0   : > { %985 = vmatpush.bf16.msrb.mxu1 %v928_v29 }
  0xa3   : > { %1475 = vmatpush.bf16.msrb.mxu3 %v3488_v30 }
  0xa4   : > { %986 = vmatpush.bf16.msrb.mxu1 %v927_v33 }
  0xa7   : > { %1476 = vmatpush.bf16.msrb.mxu3 %v3482_v23 }
  0xa8   : > { %987 = vmatpush.bf16.msrb.mxu1 %v926_v36 }
  0xab   : > { %1477 = vmatpush.bf16.msrb.mxu3 %v3456_v44 }
  0xac   : > { %988 = vmatpush.bf16.msrb.mxu1 %v925_v39 }
  0xae   : > { %810 = vmatmul.bf16.gmra.mxu0 %v3488_v30  ;;  %835 = vmatmul.bf16.gmra.mxu3 %v3462_v52 }
 0x10b   : > { %v801_v41 = vpop.f32.mrf.mxu0 }
 0x10c   : > { %v861_v42 = vmul.f32 %v3499_v40, %v801_v41  ;;  %v841_v46 = vpack.c.bf16 %v801_v41, %v801_v41  ;;  %v816_v2 = vpop.f32.mrf.mxu1 }
 0x10d   : > { %v847_v21 = vpack.c.bf16 %v816_v2, %v816_v2  ;;  %v867_v31 = vmul.f32 %v3499_v40, %v816_v2 }
 0x10e   : > { %877 = vadd.xlane.f32.xlu0 %v861_v42  ;;  %v949_v50 = vunpack.c.l.b16 %v841_v46 }
 0x10f   : > { %v955_v32 = vunpack.c.l.b16 %v847_v21 }
 0x111   : > { %v3502_v43 = vpop.f32.mrf.mxu3 }
 0x112   : > { %v851_v35 = vpack.c.bf16 %v3502_v43, %v3502_v43 }
 0x113   : > { %v803_v47 = vpop.f32.mrf.mxu0 }
 0x114   : > { %v842_v48 = vpack.c.bf16 %v803_v47, %v803_v47  ;;  %v862_v49 = vmul.f32 %v3499_v40, %v803_v47  ;;  %v3517_v10 = vpop.f32.mrf.mxu1  ;;  %v959_v41 = vunpack.c.l.b16 %v851_v35 }
 0x115   : > { %v848_v25 = vpack.c.bf16 %v3517_v10, %v3517_v10 }
 0x116   : > { %v950_v51 = vunpack.c.l.b16 %v842_v48  ;;  %879 = vadd.xlane.f32.xlu0 %v862_v49 }
 0x117   : > { %v956_v33 = vunpack.c.l.b16 %v848_v25 }
 0x118   : > { %v3505_v53 = vpack.c.b16 %v950_v51, %v949_v50 }
 0x119   : > { %v3507_v54 = vpop.f32.mrf.mxu3  ;;  %v968_v37 = vpack.c.b16 %v956_v33, %v955_v32 }
 0x11a   : > { %989 = vmatmul.bf16.vlgmr.msrb.gmra.mxu1 %v3505_v53  ;;  %v852_v36 = vpack.c.bf16 %v3507_v54, %v3507_v54 }
 0x11b   : > { %v806_v55 = vpop.f32.mrf.mxu0 }
 0x11c   : > { %v843_v56 = vpack.c.bf16 %v806_v55, %v806_v55  ;;  %v3532_v26 = vpop.f32.mrf.mxu1  ;;  %v863_v27 = vmul.f32 %v3499_v40, %v806_v55  ;;  %v960_v42 = vunpack.c.l.b16 %v852_v36 }
 0x11d   : > { %v849_v46 = vpack.c.bf16 %v3532_v26, %v3532_v26 }
 0x11e   : > { %v951_v59 = vunpack.c.l.b16 %v843_v56  ;;  %881 = vadd.xlane.f32.xlu1 %v863_v27  ;;  %v970_v48 = vpack.c.b16 %v960_v42, %v959_v41  ;;  %v3551_v56 = vld [vmem:[%s3915_s3] ss:$0 sm:$0xff] }
 0x11f   : > { %v957_v49 = vunpack.c.l.b16 %v849_v46 }
 0x121   : > { %v3510_v57 = vpop.f32.mrf.mxu3 }
 0x122   : > { %v853_v18 = vpack.c.bf16 %v3510_v57, %v3510_v57 }
 0x123   : > { %v808_v58 = vpop.f32.mrf.mxu0 }
 0x124   : > { %v844_v60 = vpack.c.bf16 %v808_v58, %v808_v58  ;;  %v961_v28 = vunpack.c.l.b16 %v853_v18  ;;  %v864_v38 = vmul.f32 %v3499_v40, %v808_v58  ;;  %v3541_v39 = vpop.f32.mrf.mxu1 }
 0x125   : > { %v850_v47 = vpack.c.bf16 %v3541_v39, %v3541_v39 }
 0x126   : > { %v952_v62 = vunpack.c.l.b16 %v844_v60  ;;  %883 = vadd.xlane.f32.xlu1 %v864_v38 }
 0x127   : > { %v958_v50 = vunpack.c.l.b16 %v850_v47 }
 0x128   : > { %v966_v63 = vpack.c.b16 %v952_v62, %v951_v59 }
 0x129   : > { %v3512_v0 = vpop.f32.mrf.mxu3  ;;  %v969_v51 = vpack.c.b16 %v958_v50, %v957_v49 }
 0x12a   : > { %994 = vmatmul.bf16.gmra.mxu1 %v966_v63  ;;  %v854_v19 = vpack.c.bf16 %v3512_v0, %v3512_v0 }
 0x12b   : > { %v811_v1 = vpop.f32.mrf.mxu0 }
 0x12c   : > { %v845_v3 = vpack.c.bf16 %v811_v1, %v811_v1  ;;  %v865_v4 = vmul.f32 %v3499_v40, %v811_v1  ;;  %v962_v29 = vunpack.c.l.b16 %v854_v19 }
 0x12e   : > { %885 = vadd.xlane.f32.xlu2 %v865_v4  ;;  %v953_v7 = vunpack.c.l.b16 %v845_v3  ;;  %v971_v34 = vpack.c.b16 %v962_v29, %v961_v28 }
 0x131   : > { %v3515_v5 = vpop.f32.mrf.mxu3 }
 0x132   : > { %v855_v11 = vpack.c.bf16 %v3515_v5, %v3515_v5 }
 0x133   : > { %v813_v6 = vpop.f32.mrf.mxu0 }
 0x134   : > { %v846_v9 = vpack.c.bf16 %v813_v6, %v813_v6  ;;  %v963_v15 = vunpack.c.l.b16 %v855_v11  ;;  %v866_v17 = vmul.f32 %v3499_v40, %v813_v6 }
 0x136   : > { %v954_v12 = vunpack.c.l.b16 %v846_v9  ;;  %887 = vadd.xlane.f32.xlu2 %v866_v17 }
 0x138   : > { %v967_v13 = vpack.c.b16 %v954_v12, %v953_v7 }
 0x139   : > { %v3521_v14 = vpop.f32.mrf.mxu3 }
 0x13a   : > { %v856_v16 = vpack.c.bf16 %v3521_v14, %v3521_v14  ;;  %999 = vmatmul.bf16.gmra.mxu1 %v967_v13 }
 0x13c   : > { %v964_v20 = vunpack.c.l.b16 %v856_v16 }
 0x13e   : > { %v972_v24 = vpack.c.b16 %v964_v20, %v963_v15  ;;  %889 = vadd.xlane.f32.xlu2 %v867_v31 }
 0x140   : > { %1114 = vmatpush.bf16.xpose.msra.mxu2 %v972_v24 }
 0x148   : > { %1115 = vmatpush.bf16.xpose.msra.mxu2 %v971_v34 }
 0x14a   : > { %1004 = vmatmul.bf16.gmra.mxu1 %v968_v37 }
 0x150   : > { %1116 = vmatpush.bf16.xpose.msra.mxu2 %v970_v48 }
 0x158   : > { %1117 = vmatpush.bf16.xpose.msra.mxu2 %v969_v51 }
 0x15a   : > { %1009 = vmatmul.bf16.gmra.mxu1 %v969_v51 }
 0x160   : > { %1118 = vmatpush.bf16.xpose.msra.mxu2 %v968_v37 }
 0x168   : > { %1119 = vmatpush.bf16.xpose.msra.mxu2 %v967_v13 }
 0x16a   : > { %1014 = vmatmul.bf16.gmra.mxu1 %v970_v48 }
 0x170   : > { %1120 = vmatpush.bf16.xpose.msra.mxu2 %v966_v63 }
 0x178   : > { %1121 = vmatpush.bf16.xpose.msra.mxu2 %v3505_v53 }
 0x17a   : > { %1019 = vmatmul.bf16.gmra.mxu1 %v971_v34 }
 0x18a   : > { %1024 = vmatmul.bf16.gmra.mxu1 %v972_v24 }
 0x197   : > { %v990_v55 = vpop.f32.mrf.mxu1 }
 0x198   : > { %v1034_v58 = vadd.f32 %v3551_v56, %v990_v55 }
 0x19a   : > { %v1050_v60 = vpack.c.bf16 %v1034_v58, %v1034_v58 }
 0x19c   : > { %v1082_v2 = vunpack.c.l.b16 %v1050_v60 }
 0x19f   : > { %v992_v59 = vpop.f32.mrf.mxu1 }
 0x1a0   : > { %v1035_v62 = vadd.f32 %v3551_v56, %v992_v59 }
 0x1a2   : > { %v1051_v1 = vpack.c.bf16 %v1035_v62, %v1035_v62 }
 0x1a4   : > { %v1083_v3 = vunpack.c.l.b16 %v1051_v1 }
 0x1a6   : > { %v1098_v63 = vpack.c.b16 %v1083_v3, %v1082_v2 }
 0x1a7   : > { %v995_v4 = vpop.f32.mrf.mxu1 }
 0x1a8   : > { %1122 = vmatmul.bf16.vlgmr.msra.gmra.mxu2 %v1098_v63  ;;  %v1036_v53 = vadd.f32 %v3551_v56, %v995_v4 }
 0x1aa   : > { %v1052_v6 = vpack.c.bf16 %v1036_v53, %v1036_v53 }
 0x1ac   : > { %v1084_v11 = vunpack.c.l.b16 %v1052_v6 }
 0x1af   : > { %v997_v7 = vpop.f32.mrf.mxu1 }
 0x1b0   : > { %v1037_v9 = vadd.f32 %v3551_v56, %v997_v7 }
 0x1b2   : > { %v1053_v12 = vpack.c.bf16 %v1037_v9, %v1037_v9 }
 0x1b4   : > { %v1085_v13 = vunpack.c.l.b16 %v1053_v12 }
 0x1b6   : > { %v1099_v15 = vpack.c.b16 %v1085_v13, %v1084_v11 }
 0x1b7   : > { %v1000_v16 = vpop.f32.mrf.mxu1 }
 0x1b8   : > { %1127 = vmatmul.bf16.gmra.mxu2 %v1099_v15  ;;  %v1038_v17 = vadd.f32 %v3551_v56, %v1000_v16 }
 0x1ba   : > { %v1054_v18 = vpack.c.bf16 %v1038_v17, %v1038_v17 }
 0x1bc   : > { %v1086_v21 = vunpack.c.l.b16 %v1054_v18 }
 0x1bf   : > { %v1002_v19 = vpop.f32.mrf.mxu1 }
 0x1c0   : > { %v1039_v20 = vadd.f32 %v3551_v56, %v1002_v19 }
 0x1c2   : > { %v1055_v24 = vpack.c.bf16 %v1039_v20, %v1039_v20 }
 0x1c4   : > { %v1087_v25 = vunpack.c.l.b16 %v1055_v24 }
 0x1c6   : > { %v1100_v27 = vpack.c.b16 %v1087_v25, %v1086_v21 }
 0x1c7   : > { %v1005_v28 = vpop.f32.mrf.mxu1 }
 0x1c8   : > { %1132 = vmatmul.bf16.gmra.mxu2 %v1100_v27  ;;  %v1040_v29 = vadd.f32 %v3551_v56, %v1005_v28  ;;  %v1243_v28 = vlaneseq }
 0x1ca   : > { %v1056_v31 = vpack.c.bf16 %v1040_v29, %v1040_v29  ;;  %v878_v29 = vpop.xlane.xlu0 %877 }
 0x1cc   : > { %v1088_v34 = vunpack.c.l.b16 %v1056_v31 }
 0x1cf   : > { %v1007_v32 = vpop.f32.mrf.mxu1 }
 0x1d0   : > { %v1041_v33 = vadd.f32 %v3551_v56, %v1007_v32  ;;  %v688_v32 = vld [vmem:[%s3426_s16] sm:$0xff] }
 0x1d1   : > { %vm1211_vm1 = vcmp.gt.f32.partialorder %v688_v32, 0.0 }
 0x1d2   : > { %v1057_v35 = vpack.c.bf16 %v1041_v33, %v1041_v33  ;;  %v3570_v33 = vand.u32 127, %v1243_v28 }
 0x1d4   : > { %v1089_v36 = vunpack.c.l.b16 %v1057_v35  ;;  %vm1245_vm2 = vcmp.lt.s32.totalorder %v3570_v33, 8 }
 0x1d6   : > { %v1101_v37 = vpack.c.b16 %v1089_v36, %v1088_v34 }
 0x1d7   : > { %v1010_v38 = vpop.f32.mrf.mxu1 }
 0x1d8   : > { %1137 = vmatmul.bf16.gmra.mxu2 %v1101_v37  ;;  %v1042_v41 = vadd.f32 %v3551_v56, %v1010_v38  ;;  %v880_v38 = vpop.xlane.xlu0 %879 }
 0x1da   : > { %v1058_v42 = vpack.c.bf16 %v1042_v41, %v1042_v41 }
 0x1dc   : > { %v1090_v48 = vunpack.c.l.b16 %v1058_v42  ;;  %v689_v42 = vld [vmem:[%s3426_s16 + $0x8] sm:$0xff] }
 0x1dd   : > { %vm1212_vm4 = vcmp.gt.f32.partialorder %v689_v42, 0.0 }
 0x1df   : > { %v1012_v46 = vpop.f32.mrf.mxu1 }
 0x1e0   : > { %v1043_v47 = vadd.f32 %v3551_v56, %v1012_v46 }
 0x1e2   : > { %v1059_v49 = vpack.c.bf16 %v1043_v47, %v1043_v47 }
 0x1e4   : > { %v1091_v50 = vunpack.c.l.b16 %v1059_v49  ;;  %v882_v49 = vpop.xlane.xlu1 %881 }
 0x1e6   : > { %v1102_v51 = vpack.c.b16 %v1091_v50, %v1090_v48 }
 0x1e7   : > { %v1015_v55 = vpop.f32.mrf.mxu1 }
 0x1e8   : > { %1142 = vmatmul.bf16.gmra.mxu2 %v1102_v51  ;;  %v1044_v58 = vadd.f32 %v3551_v56, %v1015_v55  ;;  %v868_v51 = vmul.f32 %v3499_v40, %v3517_v10 }
 0x1ea   : > { %v1060_v60 = vpack.c.bf16 %v1044_v58, %v1044_v58 }
 0x1ec   : > { %v1092_v2 = vunpack.c.l.b16 %v1060_v60 }
 0x1ef   : > { %v1017_v59 = vpop.f32.mrf.mxu1 }
 0x1f0   : > { %v1045_v62 = vadd.f32 %v3551_v56, %v1017_v59  ;;  %v690_v59 = vld [vmem:[%s3426_s16 + $0x10] sm:$0xff] }
 0x1f1   : > { %vm1213_vm6 = vcmp.gt.f32.partialorder %v690_v59, 0.0 }
 0x1f2   : > { %v1061_v1 = vpack.c.bf16 %v1045_v62, %v1045_v62 }
 0x1f4   : > { %v1093_v3 = vunpack.c.l.b16 %v1061_v1 }
 0x1f6   : > { %v1103_v63 = vpack.c.b16 %v1093_v3, %v1092_v2  ;;  %v869_v3 = vmul.f32 %v3499_v40, %v3532_v26  ;;  %v870_v26 = vmul.f32 %v3499_v40, %v3541_v39 }
 0x1f7   : > { %v1020_v4 = vpop.f32.mrf.mxu1 }
 0x1f8   : > { %1147 = vmatmul.bf16.gmra.mxu2 %v1103_v63  ;;  %v1046_v53 = vadd.f32 %v3551_v56, %v1020_v4  ;;  %v884_v63 = vpop.xlane.xlu1 %883 }
 0x1fa   : > { %v1062_v7 = vpack.c.bf16 %v1046_v53, %v1046_v53  ;;  %v691_v53 = vld [vmem:[%s3426_s16 + $0x18] sm:$0xff] }
 0x1fb   : > { %vm1214_vm8 = vcmp.gt.f32.partialorder %v691_v53, 0.0 }
 0x1fc   : > { %v1094_v12 = vunpack.c.l.b16 %v1062_v7 }
 0x1ff   : > { %v1022_v6 = vpop.f32.mrf.mxu1 }
 0x200   : > { %v1047_v9 = vadd.f32 %v3551_v56, %v1022_v6 }
 0x202   : > { %v1063_v11 = vpack.c.bf16 %v1047_v9, %v1047_v9  ;;  %v886_v9 = vpop.xlane.xlu2 %885 }
 0x204   : > { %v1095_v13 = vunpack.c.l.b16 %v1063_v11 }
 0x206   : > { %v1104_v15 = vpack.c.b16 %v1095_v13, %v1094_v12 }
 0x207   : > { %v1025_v16 = vpop.f32.mrf.mxu1 }
 0x208   : > { %1152 = vmatmul.bf16.gmra.mxu2 %v1104_v15  ;;  %v1048_v17 = vadd.f32 %v3551_v56, %v1025_v16  ;;  %v692_v16 = vld [vmem:[%s3426_s16 + $0x20] sm:$0xff] }
 0x209   : > { %vm1215_vm10 = vcmp.gt.f32.partialorder %v692_v16, 0.0 }
 0x20a   : > { %v1064_v19 = vpack.c.bf16 %v1048_v17, %v1048_v17 }
 0x20c   : > { %v1096_v24 = vunpack.c.l.b16 %v1064_v19 }
 0x20f   : > { %v1027_v18 = vpop.f32.mrf.mxu1 }
 0x210   : > { %v1049_v20 = vadd.f32 %v3551_v56, %v1027_v18 }
 0x212   : > { %v1065_v21 = vpack.c.bf16 %v1049_v20, %v1049_v20  ;;  %v888_v20 = vpop.xlane.xlu2 %887 }
 0x214   : > { %v1097_v25 = vunpack.c.l.b16 %v1065_v21  ;;  %v871_v21 = vmul.f32 %v3499_v40, %v3502_v43  ;;  %v872_v43 = vmul.f32 %v3499_v40, %v3507_v54 }
 0x216   : > { %v1105_v27 = vpack.c.b16 %v1097_v25, %v1096_v24 }
 0x218   : > { %1157 = vmatmul.bf16.gmra.mxu2 %v1105_v27  ;;  %v693_v27 = vld [vmem:[%s3426_s16 + $0x28] sm:$0xff] }
 0x219   : > { %vm1216_vm12 = vcmp.gt.f32.partialorder %v693_v27, 0.0 }
 0x22b   : > { %v1123_v31 = vpop.f32.mrf.mxu2 }
 0x22c   : > { %v1124_v34 = vadd.f32 %v1123_v31, %v878_v29 }
 0x22e   : > { %v1179_v35 = vmul.f32 0.2, %v1124_v34  ;;  %vm1163_vm0 = vcmp.gt.f32.partialorder %v1124_v34, 0.0 }
 0x230   : > { %v1195_v36 = vsel %vm1163_vm0, %v1124_v34, %v1179_v35  ;;  %v890_v35 = vpop.xlane.xlu2 %889 }
 0x231   : > { %v1227_v56 = vsel %vm1211_vm1, %v1195_v36, -9e+15 }
 0x232   : > { %v3575_v37 = vsel %vm1245_vm2, %v1227_v56, -inf  ;;  %v694_v56 = vld [vmem:[%s3426_s16 + $0x30] sm:$0xff] }
 0x233   : > { %v1125_v41 = vpop.f32.mrf.mxu2  ;;  %1262 = vmax.xlane.f32.xlu0 %v3575_v37  ;;  %vm1217_vm14 = vcmp.gt.f32.partialorder %v694_v56, 0.0 }
 0x234   : > { %v1126_v46 = vadd.f32 %v1125_v41, %v880_v38 }
 0x236   : > { %v1180_v47 = vmul.f32 0.2, %v1126_v46  ;;  %vm1164_vm3 = vcmp.gt.f32.partialorder %v1126_v46, 0.0 }
 0x238   : > { %v1196_v48 = vsel %vm1164_vm3, %v1126_v46, %v1180_v47  ;;  %v873_v46 = vmul.f32 %v3499_v40, %v3510_v57 }
 0x239   : > { %v1228_v50 = vsel %vm1212_vm4, %v1196_v48, -9e+15  ;;  %v874_v48 = vmul.f32 %v3499_v40, %v3512_v0 }
 0x23a   : > { %v3583_v55 = vsel %vm1245_vm2, %v1228_v50, -inf }
 0x23b   : > { %v1128_v58 = vpop.f32.mrf.mxu2  ;;  %1264 = vmax.xlane.f32.xlu1 %v3583_v55  ;;  %891 = vadd.xlane.f32.xlu0 %v868_v51 }
 0x23c   : > { %v1129_v60 = vadd.f32 %v1128_v58, %v882_v49 }
 0x23e   : > { %v1181_v62 = vmul.f32 0.2, %v1129_v60  ;;  %vm1165_vm5 = vcmp.gt.f32.partialorder %v1129_v60, 0.0 }
 0x240   : > { %v1197_v1 = vsel %vm1165_vm5, %v1129_v60, %v1181_v62  ;;  %v695_v60 = vld [vmem:[%s3426_s16 + $0x38] sm:$0xff] }
 0x241   : > { %v1229_v2 = vsel %vm1213_vm6, %v1197_v1, -9e+15  ;;  %vm1218_vm0 = vcmp.gt.f32.partialorder %v695_v60, 0.0 }
 0x242   : > { %v3591_v10 = vsel %vm1245_vm2, %v1229_v2, -inf }
 0x243   : > { %v1130_v4 = vpop.f32.mrf.mxu2  ;;  %1266 = vmax.xlane.f32.xlu1 %v3591_v10  ;;  %893 = vadd.xlane.f32.xlu0 %v869_v3 }
 0x244   : > { %v1131_v6 = vadd.f32 %v1130_v4, %v884_v63 }
 0x246   : > { %v1182_v7 = vmul.f32 0.2, %v1131_v6  ;;  %vm1166_vm7 = vcmp.gt.f32.partialorder %v1131_v6, 0.0 }
 0x248   : > { %v1198_v11 = vsel %vm1166_vm7, %v1131_v6, %v1182_v7 }
 0x249   : > { %v1230_v12 = vsel %vm1214_vm8, %v1198_v11, -9e+15 }
 0x24a   : > { %v3599_v13 = vsel %vm1245_vm2, %v1230_v12, -inf }
 0x24b   : > { %1268 = vmax.xlane.f32.xlu2 %v3599_v13  ;;  %895 = vadd.xlane.f32.xlu1 %v870_v26  ;;  %v1133_v15 = vpop.f32.mrf.mxu2 }
 0x24c   : > { %v1134_v17 = vadd.f32 %v1133_v15, %v886_v9 }
 0x24e   : > { %v1183_v18 = vmul.f32 0.2, %v1134_v17  ;;  %vm1167_vm9 = vcmp.gt.f32.partialorder %v1134_v17, 0.0 }
 0x250   : > { %v1199_v19 = vsel %vm1167_vm9, %v1134_v17, %v1183_v18 }
 0x251   : > { %v1231_v39 = vsel %vm1215_vm10, %v1199_v19, -9e+15 }
 0x252   : > { %v3607_v24 = vsel %vm1245_vm2, %v1231_v39, -inf }
 0x253   : > { %897 = vadd.xlane.f32.xlu1 %v871_v21  ;;  %v1135_v25 = vpop.f32.mrf.mxu2  ;;  %1270 = vmax.xlane.f32.xlu2 %v3607_v24 }
 0x254   : > { %v1136_v28 = vadd.f32 %v1135_v25, %v888_v20  ;;  %v697_v20 = vld [vmem:[%s3426_s16 + $0x48] sm:$0xff] }
 0x255   : > { %vm1220_vm5 = vcmp.gt.f32.partialorder %v697_v20, 0.0 }
 0x256   : > { %v1184_v29 = vmul.f32 0.2, %v1136_v28  ;;  %vm1168_vm11 = vcmp.gt.f32.partialorder %v1136_v28, 0.0 }
 0x258   : > { %v1200_v31 = vsel %vm1168_vm11, %v1136_v28, %v1184_v29  ;;  %v875_v28 = vmul.f32 %v3499_v40, %v3515_v5  ;;  %v698_v5 = vld [vmem:[%s3426_s16 + $0x50] sm:$0xff] }
 0x259   : > { %v1232_v32 = vsel %vm1216_vm12, %v1200_v31, -9e+15  ;;  %vm1221_vm7 = vcmp.gt.f32.partialorder %v698_v5, 0.0 }
 0x25a   : > { %v3615_v34 = vsel %vm1245_vm2, %v1232_v32, -inf }
 0x25b   : > { %1272 = vmax.xlane.f32.xlu0 %v3615_v34  ;;  %899 = vadd.xlane.f32.xlu2 %v872_v43  ;;  %v1138_v36 = vpop.f32.mrf.mxu2 }
 0x25c   : > { %v1139_v38 = vadd.f32 %v1138_v36, %v890_v35 }
 0x25e   : > { %v1185_v41 = vmul.f32 0.2, %v1139_v38  ;;  %vm1169_vm13 = vcmp.gt.f32.partialorder %v1139_v38, 0.0 }
 0x260   : > { %v1201_v42 = vsel %vm1169_vm13, %v1139_v38, %v1185_v41 }
 0x261   : > { %v1233_v54 = vsel %vm1217_vm14, %v1201_v42, -9e+15 }
 0x262   : > { %v3623_v47 = vsel %vm1245_vm2, %v1233_v54, -inf }
 0x263   : > { %901 = vadd.xlane.f32.xlu2 %v873_v46  ;;  %1274 = vmax.xlane.f32.xlu0 %v3623_v47  ;;  %v1140_v49 = vpop.f32.mrf.mxu2 }
 0x26b   : > { %903 = vadd.xlane.f32.xlu0 %v874_v48  ;;  %v1143_v51 = vpop.f32.mrf.mxu2 }
 0x273   : > { %v1145_v53 = vpop.f32.mrf.mxu2 }
 0x27b   : > { %v1148_v27 = vpop.f32.mrf.mxu2 }
 0x2a6   : > { %v1263_v50 = vpop.xlane.xlu0 %1262 }
 0x2a7   : > { %v1294_v57 = vsub.f32 %v3575_v37, %v1263_v50  ;;  %v696_v37 = vld [vmem:[%s3426_s16 + $0x40] sm:$0xff] }
 0x2a8   : > { %vm1219_vm3 = vcmp.gt.f32.partialorder %v696_v37, 0.0 }
 0x2a9   : > { %v1310_v63 = vmul.f32 1.442695, %v1294_v57 }
 0x2ae   : > { %v1265_v58 = vpop.xlane.xlu1 %1264  ;;  %v892_v59 = vpop.xlane.xlu0 %891 }
 0x2af   : > { %v1295_v62 = vsub.f32 %v3583_v55, %v1265_v58  ;;  %v1141_v1 = vadd.f32 %v1140_v49, %v892_v59  ;;  %v699_v58 = vld [vmem:[%s3426_s16 + $0x58] sm:$0xff] }
 0x2b0   : > { %vm1222_vm9 = vcmp.gt.f32.partialorder %v699_v58, 0.0  ;;  %v703_v58 = vld [vmem:[%s3426_s16 + $0x78] sm:$0xff] }
 0x2b1   : > { %v1312_v2 = vmul.f32 1.442695, %v1295_v62  ;;  %v1186_v3 = vmul.f32 0.2, %v1141_v1  ;;  %vm1170_vm15 = vcmp.gt.f32.partialorder %v1141_v1, 0.0 }
 0x2b3   : > { %2685 = vpow2.f32 %v1312_v2  ;;  %v1202_v0 = vsel %vm1170_vm15, %v1141_v1, %v1186_v3 }
 0x2b4   : > { %v1234_v4 = vsel %vm1218_vm0, %v1202_v0, -9e+15  ;;  %2687 = vpow2.f32 %v1310_v63  ;;  %vm1226_vm0 = vcmp.gt.f32.partialorder %v703_v58, 0.0 }
 0x2b5   : > { %v3633_v6 = vsel %vm1245_vm2, %v1234_v4, -inf }
 0x2b6   : > { %v1267_v7 = vpop.xlane.xlu1 %1266  ;;  %v894_v9 = vpop.xlane.xlu0 %893  ;;  %1276 = vmax.xlane.f32.xlu1 %v3633_v6 }
 0x2b7   : > { %v1144_v55 = vadd.f32 %v1143_v51, %v894_v9  ;;  %v1296_v21 = vsub.f32 %v3591_v10, %v1267_v7  ;;  %v876_v10 = vmul.f32 %v3499_v40, %v3521_v14  ;;  %v1150_v40 = vpop.f32.mrf.mxu2 }
 0x2b9   : > { %v3637_v11 = vpop.eup %2685  ;;  %v1187_v12 = vmul.f32 0.2, %v1144_v55  ;;  %vm1171_vm1 = vcmp.gt.f32.partialorder %v1144_v55, 0.0  ;;  %v1314_v32 = vmul.f32 1.442695, %v1296_v21 }
 0x2ba   : > { %1344 = vadd.xlane.f32.xlu2 %v3637_v11  ;;  %v3640_v16 = vpop.eup %2687 }
 0x2bb   : > { %v1203_v26 = vsel %vm1171_vm1, %v1144_v55, %v1187_v12 }
 0x2bc   : > { %v1235_v15 = vsel %vm1219_vm3, %v1203_v26, -9e+15 }
 0x2bd   : > { %v3644_v17 = vsel %vm1245_vm2, %v1235_v15, -inf }
 0x2be   : > { %v1269_v18 = vpop.xlane.xlu2 %1268  ;;  %v896_v19 = vpop.xlane.xlu1 %895  ;;  %1342 = vadd.xlane.f32.xlu1 %v3640_v16  ;;  %1278 = vmax.xlane.f32.xlu0 %v3644_v17 }
 0x2bf   : > { %v1297_v39 = vsub.f32 %v3599_v13, %v1269_v18  ;;  %v1146_v25 = vadd.f32 %v1145_v53, %v896_v19  ;;  %v1153_v3 = vpop.f32.mrf.mxu2  ;;  %v700_v53 = vld [vmem:[%s3426_s16 + $0x60] sm:$0xff] }
 0x2c0   : > { %vm1223_vm11 = vcmp.gt.f32.partialorder %v700_v53, 0.0 }
 0x2c1   : > { %v1316_v29 = vmul.f32 1.442695, %v1297_v39  ;;  %v1188_v31 = vmul.f32 0.2, %v1146_v25  ;;  %vm1172_vm4 = vcmp.gt.f32.partialorder %v1146_v25, 0.0 }
 0x2c2   : > { %905 = vadd.xlane.f32.xlu2 %v875_v28 }
 0x2c3   : > { %2689 = vpow2.f32 %v1316_v29  ;;  %v1204_v43 = vsel %vm1172_vm4, %v1146_v25, %v1188_v31 }
 0x2c4   : > { %v1236_v35 = vsel %vm1220_vm5, %v1204_v43, -9e+15  ;;  %2691 = vpow2.f32 %v1314_v32 }
 0x2c5   : > { %v3657_v13 = vsel %vm1245_vm2, %v1236_v35, -inf }
 0x2c6   : > { %v898_v36 = vpop.xlane.xlu1 %897  ;;  %v1271_v56 = vpop.xlane.xlu2 %1270  ;;  %1280 = vmax.xlane.f32.xlu1 %v3657_v13  ;;  %907 = vadd.xlane.f32.xlu0 %v876_v10 }
 0x2c7   : > { %v1149_v38 = vadd.f32 %v1148_v27, %v898_v36  ;;  %v1298_v41 = vsub.f32 %v3607_v24, %v1271_v56  ;;  %v1155_v19 = vpop.f32.mrf.mxu2 }
 0x2c9   : > { %v3662_v42 = vpop.eup %2689  ;;  %v1189_v46 = vmul.f32 0.2, %v1149_v38  ;;  %v1318_v54 = vmul.f32 1.442695, %v1298_v41  ;;  %vm1173_vm6 = vcmp.gt.f32.partialorder %v1149_v38, 0.0 }
 0x2ca   : > { %1348 = vadd.xlane.f32.xlu2 %v3662_v42  ;;  %v3665_v49 = vpop.eup %2691 }
 0x2cb   : > { %2693 = vpow2.f32 %v1318_v54  ;;  %v1205_v14 = vsel %vm1173_vm6, %v1149_v38, %v1189_v46 }
 0x2cc   : > { %v1237_v48 = vsel %vm1221_vm7, %v1205_v14, -9e+15 }
 0x2cd   : > { %v3669_v50 = vsel %vm1245_vm2, %v1237_v48, -inf }
 0x2ce   : > { %v1273_v24 = vpop.xlane.xlu0 %1272  ;;  %v900_v51 = vpop.xlane.xlu2 %899  ;;  %1346 = vadd.xlane.f32.xlu1 %v3665_v49  ;;  %1282 = vmax.xlane.f32.xlu0 %v3669_v50 }
 0x2cf   : > { %v1299_v59 = vsub.f32 %v3615_v34, %v1273_v24  ;;  %v1151_v60 = vadd.f32 %v1150_v40, %v900_v51  ;;  %v1158_v10 = vpop.f32.mrf.mxu2  ;;  %v702_v40 = vld [vmem:[%s3426_s16 + $0x70] sm:$0xff] }
 0x2d0   : > { %vm1225_vm15 = vcmp.gt.f32.partialorder %v702_v40, 0.0 }
 0x2d1   : > { %v3675_v57 = vpop.eup %2693  ;;  %v1320_v62 = vmul.f32 1.442695, %v1299_v59  ;;  %v1190_v1 = vmul.f32 0.2, %v1151_v60  ;;  %vm1174_vm8 = vcmp.gt.f32.partialorder %v1151_v60, 0.0 }
 0x2d2   : > { %1350 = vadd.xlane.f32.xlu2 %v3675_v57 }
 0x2d3   : > { %2695 = vpow2.f32 %v1320_v62  ;;  %v1206_v2 = vsel %vm1174_vm8, %v1151_v60, %v1190_v1 }
 0x2d4   : > { %v1238_v63 = vsel %vm1222_vm9, %v1206_v2, -9e+15 }
 0x2d5   : > { %v3680_v0 = vsel %vm1245_vm2, %v1238_v63, -inf }
 0x2d6   : > { %v902_v4 = vpop.xlane.xlu2 %901  ;;  %v1275_v34 = vpop.xlane.xlu0 %1274  ;;  %1284 = vmax.xlane.f32.xlu1 %v3680_v0 }
 0x2d7   : > { %v1154_v7 = vadd.f32 %v1153_v3, %v902_v4  ;;  %v1300_v9 = vsub.f32 %v3623_v47, %v1275_v34  ;;  %v701_v47 = vld [vmem:[%s3426_s16 + $0x68] sm:$0xff]  ;;  %v1160_v24 = vpop.f32.mrf.mxu2 }
 0x2d8   : > { %vm1224_vm13 = vcmp.gt.f32.partialorder %v701_v47, 0.0 }
 0x2d9   : > { %v3685_v37 = vpop.eup %2695  ;;  %v1191_v55 = vmul.f32 0.2, %v1154_v7  ;;  %v1322_v12 = vmul.f32 1.442695, %v1300_v9  ;;  %vm1175_vm10 = vcmp.gt.f32.partialorder %v1154_v7, 0.0 }
 0x2da   : > { %1352 = vadd.xlane.f32.xlu0 %v3685_v37 }
 0x2db   : > { %2697 = vpow2.f32 %v1322_v12  ;;  %v1207_v26 = vsel %vm1175_vm10, %v1154_v7, %v1191_v55 }
 0x2dc   : > { %v1239_v15 = vsel %vm1223_vm11, %v1207_v26, -9e+15 }
 0x2dd   : > { %v3690_v18 = vsel %vm1245_vm2, %v1239_v15, -inf }
 0x2de   : > { %v904_v20 = vpop.xlane.xlu0 %903  ;;  %1286 = vmax.xlane.f32.xlu1 %v3690_v18 }
 0x2df   : > { %v1156_v21 = vadd.f32 %v1155_v19, %v904_v20 }
 0x2e1   : > { %v3694_v39 = vpop.eup %2697  ;;  %v1192_v25 = vmul.f32 0.2, %v1156_v21  ;;  %vm1176_vm12 = vcmp.gt.f32.partialorder %v1156_v21, 0.0 }
 0x2e2   : > { %1354 = vadd.xlane.f32.xlu0 %v3694_v39 }
 0x2e3   : > { %v1208_v27 = vsel %vm1176_vm12, %v1156_v21, %v1192_v25 }
 0x2e4   : > { %v1240_v28 = vsel %vm1224_vm13, %v1208_v27, -9e+15 }
 0x2e5   : > { %v3699_v29 = vsel %vm1245_vm2, %v1240_v28, -inf }
 0x2e6   : > { %1288 = vmax.xlane.f32.xlu2 %v3699_v29 }
 0x329   : > { %v1277_v31 = vpop.xlane.xlu1 %1276 }
 0x32a   : > { %v1301_v32 = vsub.f32 %v3633_v6, %v1277_v31 }
 0x32c   : > { %v1324_v43 = vmul.f32 1.442695, %v1301_v32 }
 0x32d   : > { %v1345_v35 = vpop.xlane.xlu2 %1344 }
 0x32e   : > { %2699 = vpow2.f32 %v1324_v43 }
 0x32f   : > { %2701 = vrcp.f32 %v1345_v35 }
 0x331   : > { %v1343_v36 = vpop.xlane.xlu1 %1342  ;;  %v1279_v56 = vpop.xlane.xlu0 %1278 }
 0x332   : > { %2703 = vrcp.f32 %v1343_v36  ;;  %v1302_v5 = vsub.f32 %v3644_v17, %v1279_v56 }
 0x334   : > { %v3704_v38 = vpop.eup %2699  ;;  %v1326_v41 = vmul.f32 1.442695, %v1302_v5 }
 0x335   : > { %v2702_v46 = vpop.eup %2701  ;;  %v906_v54 = vpop.xlane.xlu2 %905  ;;  %1356 = vadd.xlane.f32.xlu1 %v3704_v38 }
 0x336   : > { %2705 = vpow2.f32 %v1326_v41  ;;  %v1159_v6 = vadd.f32 %v1158_v10, %v906_v54  ;;  %v1391_v14 = vmul.f32 %v2702_v46, %v3637_v11 }
 0x338   : > { %v2704_v48 = vpop.eup %2703  ;;  %v1193_v51 = vmul.f32 0.2, %v1159_v6  ;;  %vm1177_vm14 = vcmp.gt.f32.partialorder %v1159_v6, 0.0  ;;  %v1407_v62 = vpack.c.bf16 %v1391_v14, %v1391_v14 }
 0x339   : > { %v1281_v59 = vpop.xlane.xlu1 %1280  ;;  %v908_v17 = vpop.xlane.xlu0 %907  ;;  %v1390_v60 = vmul.f32 %v2704_v48, %v3640_v16 }
 0x33a   : > { %v1303_v1 = vsub.f32 %v3657_v13, %v1281_v59  ;;  %v1161_v2 = vadd.f32 %v1160_v24, %v908_v17  ;;  %v1209_v3 = vsel %vm1177_vm14, %v1159_v6, %v1193_v51  ;;  %v1439_v13 = vunpack.c.l.b16 %v1407_v62 }
 0x33b   : > { %v1241_v63 = vsel %vm1225_vm15, %v1209_v3, -9e+15  ;;  %v1406_v4 = vpack.c.bf16 %v1390_v60, %v1390_v60 }
 0x33c   : > { %v3712_v34 = vpop.eup %2705  ;;  %v1328_v11 = vmul.f32 1.442695, %v1303_v1  ;;  %v1194_v53 = vmul.f32 0.2, %v1161_v2  ;;  %v3716_v7 = vsel %vm1245_vm2, %v1241_v63, -inf  ;;  %vm1178_vm1 = vcmp.gt.f32.partialorder %v1161_v2, 0.0 }
 0x33d   : > { %v1349_v9 = vpop.xlane.xlu2 %1348  ;;  %1358 = vadd.xlane.f32.xlu1 %v3712_v34  ;;  %1290 = vmax.xlane.f32.xlu2 %v3716_v7  ;;  %v1438_v16 = vunpack.c.l.b16 %v1406_v4  ;;  %v1674_v63 = vld [vmem:[#allocation11 + $0x70] sm:$0xff] }
 0x33e   : > { %2707 = vpow2.f32 %v1328_v11  ;;  %v1210_v55 = vsel %vm1178_vm1, %v1161_v2, %v1194_v53  ;;  %v1675_v11 = vld [vmem:[#allocation11 + $0x78] sm:$0xff]  ;;  %v1547_v53 = vld [vmem:[#allocation10 + $0x60] sm:$0xff] }
 0x33f   : > { %2709 = vrcp.f32 %v1349_v9  ;;  %v1454_v12 = vpack.c.b16 %v1439_v13, %v1438_v16  ;;  %v1242_v26 = vsel %vm1226_vm0, %v1210_v55, -9e+15  ;;  %v1548_v9 = vld [vmem:[#allocation10 + $0x68] sm:$0xff]  ;;  %v1672_v16 = vld [vmem:[#allocation11 + $0x60] sm:$0xff] }
 0x340   : > { %v3722_v15 = vsel %vm1245_vm2, %v1242_v26, -inf  ;;  %v1557_v13 = vpack.c.bf16 %v1548_v9, %v1547_v53  ;;  %v1673_v55 = vld [vmem:[#allocation11 + $0x68] sm:$0xff]  ;;  %v1545_v26 = vld [vmem:[#allocation10 + $0x50] sm:$0xff] }
 0x341   : > { %1478 = vmatmul.bf16.vlgmr.msrb.gmra.mxu3 %v1454_v12  ;;  %v1347_v19 = vpop.xlane.xlu1 %1346  ;;  %v1283_v20 = vpop.xlane.xlu0 %1282  ;;  %1292 = vmax.xlane.f32.xlu0 %v3722_v15  ;;  %v1682_v12 = vpack.c.bf16 %v1673_v55, %v1672_v16 }
 0x342   : > { %2711 = vrcp.f32 %v1347_v19  ;;  %v1304_v47 = vsub.f32 %v3669_v50, %v1283_v20  ;;  %v1546_v19 = vld [vmem:[#allocation10 + $0x58] sm:$0xff]  ;;  %v1670_v20 = vld [vmem:[#allocation11 + $0x50] sm:$0xff] }
 0x344   : > { %v3726_v21 = vpop.eup %2707  ;;  %v1330_v25 = vmul.f32 1.442695, %v1304_v47  ;;  %v1556_v47 = vpack.c.bf16 %v1546_v19, %v1545_v26 }
 0x345   : > { %v2710_v27 = vpop.eup %2709  ;;  %1360 = vadd.xlane.f32.xlu2 %v3726_v21  ;;  %v1351_v31 = vpop.xlane.xlu2 %1350 }
 0x346   : > { %2713 = vpow2.f32 %v1330_v25  ;;  %v1393_v28 = vmul.f32 %v2710_v27, %v3662_v42  ;;  %v1671_v25 = vld [vmem:[#allocation11 + $0x58] sm:$0xff] }
 0x347   : > { %2715 = vrcp.f32 %v1351_v31  ;;  %v1681_v27 = vpack.c.bf16 %v1671_v25, %v1670_v20  ;;  %v1668_v31 = vld [vmem:[#allocation11 + $0x40] sm:$0xff] }
 0x348   : > { %v2712_v33 = vpop.eup %2711  ;;  %v1409_v35 = vpack.c.bf16 %v1393_v28, %v1393_v28  ;;  %v1543_v28 = vld [vmem:[#allocation10 + $0x40] sm:$0xff] }
 0x349   : > { %v1285_v32 = vpop.xlane.xlu1 %1284  ;;  %v1392_v43 = vmul.f32 %v2712_v33, %v3665_v49  ;;  %v1544_v33 = vld [vmem:[#allocation10 + $0x48] sm:$0xff] }
 0x34a   : > { %v1305_v10 = vsub.f32 %v3680_v0, %v1285_v32  ;;  %v1441_v46 = vunpack.c.l.b16 %v1409_v35  ;;  %v1555_v32 = vpack.c.bf16 %v1544_v33, %v1543_v28 }
 0x34b   : > { %v1408_v36 = vpack.c.bf16 %v1392_v43, %v1392_v43  ;;  %v1669_v43 = vld [vmem:[#allocation11 + $0x48] sm:$0xff] }
 0x34c   : > { %v3732_v56 = vpop.eup %2713  ;;  %v1332_v50 = vmul.f32 1.442695, %v1305_v10  ;;  %v1680_v35 = vpack.c.bf16 %v1669_v43, %v1668_v31 }
 0x34d   : > { %v1353_v5 = vpop.xlane.xlu0 %1352  ;;  %1362 = vadd.xlane.f32.xlu0 %v3732_v56  ;;  %v1440_v41 = vunpack.c.l.b16 %v1408_v36  ;;  %v2716_v40 = vpop.eup %2715  ;;  %v1541_v36 = vld [vmem:[#allocation10 + $0x30] sm:$0xff] }
 0x34e   : > { %2717 = vpow2.f32 %v1332_v50  ;;  %v1394_v48 = vmul.f32 %v2716_v40, %v3675_v57  ;;  %v1549_v57 = vld [vmem:[#allocation10 + $0x70] sm:$0xff]  ;;  %v1542_v50 = vld [vmem:[#allocation10 + $0x38] sm:$0xff]  ;;  %v1540_v40 = vld [vmem:[#allocation10 + $0x28] sm:$0xff] }
 0x34f   : > { %2719 = vrcp.f32 %v1353_v5  ;;  %v1455_v42 = vpack.c.b16 %v1441_v46, %v1440_v41  ;;  %v1666_v5 = vld [vmem:[#allocation11 + $0x30] sm:$0xff]  ;;  %v1554_v41 = vpack.c.bf16 %v1542_v50, %v1541_v36  ;;  %v1667_v46 = vld [vmem:[#allocation11 + $0x38] sm:$0xff] }
 0x350   : > { %v1410_v59 = vpack.c.bf16 %v1394_v48, %v1394_v48 }
 0x351   : > { %1483 = vmatmul.bf16.gmra.mxu3 %v1455_v42  ;;  %v1287_v54 = vpop.xlane.xlu1 %1286  ;;  %v1679_v42 = vpack.c.bf16 %v1667_v46, %v1666_v5 }
 0x352   : > { %v1306_v49 = vsub.f32 %v3690_v18, %v1287_v54  ;;  %v1442_v1 = vunpack.c.l.b16 %v1410_v59  ;;  %v1539_v54 = vld [vmem:[#allocation10 + $0x20] sm:$0xff]  ;;  %v1538_v59 = vld [vmem:[#allocation10 + $0x18] sm:$0xff] }
 0x354   : > { %v3736_v6 = vpop.eup %2717  ;;  %v1334_v0 = vmul.f32 1.442695, %v1306_v49  ;;  %v1664_v49 = vld [vmem:[#allocation11 + $0x20] sm:$0xff] }
 0x355   : > { %v2720_v14 = vpop.eup %2719  ;;  %1364 = vadd.xlane.f32.xlu1 %v3736_v6  ;;  %v1355_v10 = vpop.xlane.xlu0 %1354 }
 0x356   : > { %2721 = vpow2.f32 %v1334_v0  ;;  %v1395_v24 = vmul.f32 %v2720_v14, %v3685_v37  ;;  %v1550_v37 = vld [vmem:[#allocation10 + $0x78] sm:$0xff]  ;;  %v1553_v0 = vpack.c.bf16 %v1540_v40, %v1539_v54  ;;  %v1665_v14 = vld [vmem:[#allocation11 + $0x28] sm:$0xff] }
 0x357   : > { %v1558_v4 = vpack.c.bf16 %v1550_v37, %v1549_v57  ;;  %v1535_v57 = vld [vmem:[#allocation10] sm:$0xff]  ;;  %v1536_v37 = vld [vmem:[#allocation10 + $0x8] sm:$0xff] }
 0x358   : > { %v1411_v51 = vpack.c.bf16 %v1395_v24, %v1395_v24  ;;  %v1678_v24 = vpack.c.bf16 %v1665_v14, %v1664_v49 }
 0x359   : > { %v1289_v58 = vpop.xlane.xlu2 %1288  ;;  %1563 = vmatpush.bf16.msrb.mxu0 %v1558_v4 }
 0x35a   : > { %v1307_v17 = vsub.f32 %v3699_v29, %v1289_v58  ;;  %v1443_v60 = vunpack.c.l.b16 %v1411_v51  ;;  %v1683_v29 = vpack.c.bf16 %v1675_v11, %v1674_v63  ;;  %v1537_v58 = vld [vmem:[#allocation10 + $0x10] sm:$0xff]  ;;  %v1660_v63 = vld [vmem:[#allocation11] sm:$0xff]  ;;  %v1551_v11 = vpack.c.bf16 %v1536_v37, %v1535_v57 }
 0x35c   : > { %v3742_v62 = vpop.eup %2721  ;;  %v1336_v18 = vmul.f32 1.442695, %v1307_v17  ;;  %v1456_v2 = vpack.c.b16 %v1443_v60, %v1442_v1  ;;  %1736 = vmatpush.bf16.msra.mxu1 %v1683_v29  ;;  %v1662_v17 = vld [vmem:[#allocation11 + $0x10] sm:$0xff]  ;;  %v1552_v60 = vpack.c.bf16 %v1538_v59, %v1537_v58  ;;  %v1661_v29 = vld [vmem:[#allocation11 + $0x8] sm:$0xff] }
 0x35d   : > { %1366 = vadd.xlane.f32.xlu2 %v3742_v62  ;;  %1564 = vmatpush.bf16.msrb.mxu0 %v1557_v13  ;;  %v1676_v13 = vpack.c.bf16 %v1661_v29, %v1660_v63 }
 0x35e   : > { %2723 = vpow2.f32 %v1336_v18  ;;  %v1663_v18 = vld [vmem:[#allocation11 + $0x18] sm:$0xff] }
 0x35f   : > { %2725 = vrcp.f32 %v1355_v10 }
 0x360   : > { %1737 = vmatpush.bf16.msra.mxu1 %v1682_v12 }
 0x361   : > { %1488 = vmatmul.bf16.gmra.mxu3 %v1456_v2  ;;  %1565 = vmatpush.bf16.msrb.mxu0 %v1556_v47  ;;  %v1677_v2 = vpack.c.bf16 %v1663_v18, %v1662_v17 }
 0x364   : > { %v3745_v3 = vpop.eup %2723  ;;  %1738 = vmatpush.bf16.msra.mxu1 %v1681_v27 }
 0x365   : > { %1368 = vadd.xlane.f32.xlu0 %v3745_v3  ;;  %1566 = vmatpush.bf16.msrb.mxu0 %v1555_v32  ;;  %v2726_v51 = vpop.eup %2725 }
 0x366   : > { %v1396_v1 = vmul.f32 %v2726_v51, %v3694_v39 }
 0x368   : > { %1739 = vmatpush.bf16.msra.mxu1 %v1680_v35  ;;  %v1412_v16 = vpack.c.bf16 %v1396_v1, %v1396_v1 }
 0x369   : > { %1567 = vmatpush.bf16.msrb.mxu0 %v1554_v41 }
 0x36a   : > { %v1444_v20 = vunpack.c.l.b16 %v1412_v16 }
 0x36c   : > { %1740 = vmatpush.bf16.msra.mxu1 %v1679_v42 }
 0x36d   : > { %1568 = vmatpush.bf16.msrb.mxu0 %v1553_v0 }
 0x370   : > { %1741 = vmatpush.bf16.msra.mxu1 %v1678_v24 }
 0x371   : > { %1569 = vmatpush.bf16.msrb.mxu0 %v1552_v60 }
 0x374   : > { %1742 = vmatpush.bf16.msra.mxu1 %v1677_v2 }
 0x375   : > { %1570 = vmatpush.bf16.msrb.mxu0 %v1551_v11 }
 0x378   : > { %1743 = vmatpush.bf16.msra.mxu1 %v1676_v13  ;;  %1571 = vmatmul.bf16.vlgmr.msrb.gmra.mxu0 %v3456_v44 }
 0x388   : > { %1576 = vmatmul.bf16.gmra.mxu0 %v3482_v23 }
 0x398   : > { %1581 = vmatmul.bf16.gmra.mxu0 %v3488_v30 }
 0x3a8   : > { %v1357_v48 = vpop.xlane.xlu1 %1356  ;;  %1586 = vmatmul.bf16.gmra.mxu0 %v3473_v8  ;;  %v1856_v8 = vld [vmem:[#allocation13 + $0x78] sm:$0xff] }
 0x3a9   : > { %2727 = vrcp.f32 %v1357_v48 }
 0x3af   : > { %v2728_v4 = vpop.eup %2727 }
 0x3b0   : > { %v1291_v53 = vpop.xlane.xlu2 %1290  ;;  %v1397_v9 = vmul.f32 %v2728_v4, %v3704_v38  ;;  %v1359_v55 = vpop.xlane.xlu1 %1358 }
 0x3b1   : > { %v1308_v12 = vsub.f32 %v3716_v7, %v1291_v53  ;;  %2729 = vrcp.f32 %v1359_v55 }
 0x3b2   : > { %v1413_v26 = vpack.c.bf16 %v1397_v9, %v1397_v9 }
 0x3b3   : > { %v1338_v39 = vmul.f32 1.442695, %v1308_v12 }
 0x3b4   : > { %v1293_v19 = vpop.xlane.xlu0 %1292  ;;  %v1445_v47 = vunpack.c.l.b16 %v1413_v26 }
 0x3b5   : > { %2731 = vpow2.f32 %v1338_v39  ;;  %v1309_v25 = vsub.f32 %v3722_v15, %v1293_v19 }
 0x3b6   : > { %v1457_v27 = vpack.c.b16 %v1445_v47, %v1444_v20 }
 0x3b7   : > { %v1340_v38 = vmul.f32 1.442695, %v1309_v25  ;;  %v2730_v33 = vpop.eup %2729  ;;  %v1888_v25 = vld [vmem:[#allocation14 + $0x78] sm:$0xff] }
 0x3b8   : > { %1493 = vmatmul.bf16.gmra.mxu3 %v1457_v27  ;;  %v1361_v28 = vpop.xlane.xlu2 %1360  ;;  %v1398_v31 = vmul.f32 %v2730_v33, %v3712_v34  ;;  %1591 = vmatmul.bf16.gmra.mxu0 %v3480_v22  ;;  %v1855_v27 = vld [vmem:[#allocation13 + $0x70] sm:$0xff]  ;;  %v1885_v33 = vld [vmem:[#allocation14 + $0x60] sm:$0xff] }
 0x3b9   : > { %2733 = vpow2.f32 %v1340_v38 }
 0x3ba   : > { %2735 = vrcp.f32 %v1361_v28  ;;  %v1414_v35 = vpack.c.bf16 %v1398_v31, %v1398_v31  ;;  %v1864_v28 = vpack.c.bf16 %v1856_v8, %v1855_v27  ;;  %v1886_v31 = vld [vmem:[#allocation14 + $0x68] sm:$0xff] }
 0x3bb   : > { %v3753_v7 = vpop.eup %2731 }
 0x3bc   : > { %1370 = vadd.xlane.f32.xlu1 %v3753_v7  ;;  %v1446_v50 = vunpack.c.l.b16 %v1414_v35  ;;  %1946 = vmatpush.bf16.msrb.mxu2 %v1864_v28  ;;  %v1884_v35 = vld [vmem:[#allocation14 + $0x58] sm:$0xff] }
 0x3bf   : > { %v3757_v32 = vpop.eup %2733 }
 0x3c0   : > { %v2736_v43 = vpop.eup %2735  ;;  %v1363_v44 = vpop.xlane.xlu0 %1362  ;;  %1372 = vadd.xlane.f32.xlu2 %v3757_v32 }
 0x3c1   : > { %v1399_v15 = vmul.f32 %v2736_v43, %v3726_v21  ;;  %2737 = vrcp.f32 %v1363_v44  ;;  %v1853_v43 = vld [vmem:[#allocation13 + $0x60] sm:$0xff]  ;;  %v1895_v44 = vpack.c.bf16 %v1886_v31, %v1885_v33 }
 0x3c3   : > { %v1415_v10 = vpack.c.bf16 %v1399_v15, %v1399_v15  ;;  %v1854_v15 = vld [vmem:[#allocation13 + $0x68] sm:$0xff] }
 0x3c4   : > { %v1479_v36 = vpop.f32.mrf.mxu3  ;;  %v1863_v22 = vpack.c.bf16 %v1854_v15, %v1853_v43 }
 0x3c5   : > { %v1447_v5 = vunpack.c.l.b16 %v1415_v10  ;;  %v1519_v34 = vpack.c.bf16 %v1479_v36, %v1479_v36  ;;  %v1852_v36 = vld [vmem:[#allocation13 + $0x58] sm:$0xff] }
 0x3c6   : > { %1947 = vmatpush.bf16.msrb.mxu2 %v1863_v22 }
 0x3c7   : > { %v1458_v41 = vpack.c.b16 %v1447_v5, %v1446_v50  ;;  %v2738_v42 = vpop.eup %2737  ;;  %v1704_v21 = vunpack.c.l.b16 %v1519_v34  ;;  %v1881_v5 = vld [vmem:[#allocation14 + $0x40] sm:$0xff]  ;;  %v1850_v34 = vld [vmem:[#allocation13 + $0x48] sm:$0xff] }
 0x3c8   : > { %v1365_v46 = vpop.xlane.xlu1 %1364  ;;  %v1400_v40 = vmul.f32 %v2738_v42, %v3732_v56  ;;  %1596 = vmatmul.bf16.gmra.mxu0 %v3458_v45  ;;  %v1883_v45 = vld [vmem:[#allocation14 + $0x50] sm:$0xff] }
 0x3c9   : > { %2739 = vrcp.f32 %v1365_v46  ;;  %1498 = vmatmul.bf16.gmra.mxu3 %v1458_v41  ;;  %v1894_v10 = vpack.c.bf16 %v1884_v35, %v1883_v45  ;;  %v1882_v41 = vld [vmem:[#allocation14 + $0x48] sm:$0xff]  ;;  %v1849_v46 = vld [vmem:[#allocation13 + $0x40] sm:$0xff] }
 0x3ca   : > { %v1416_v51 = vpack.c.bf16 %v1400_v40, %v1400_v40  ;;  %v1893_v42 = vpack.c.bf16 %v1882_v41, %v1881_v5 }
 0x3cc   : > { %v1481_v54 = vpop.f32.mrf.mxu3  ;;  %v1448_v17 = vunpack.c.l.b16 %v1416_v51  ;;  %v3775_v51 = vld [vmem:[%s3919_s7] ss:$0 sm:$0xff] }
 0x3cd   : > { %v1520_v49 = vpack.c.bf16 %v1481_v54, %v1481_v54  ;;  %v1861_v54 = vpack.c.bf16 %v1850_v34, %v1849_v46 }
 0x3cf   : > { %v2740_v0 = vpop.eup %2739  ;;  %v1705_v14 = vunpack.c.l.b16 %v1520_v49  ;;  %v1880_v49 = vld [vmem:[#allocation14 + $0x38] sm:$0xff] }
 0x3d0   : > { %v1367_v48 = vpop.xlane.xlu2 %1366  ;;  %v1401_v24 = vmul.f32 %v2740_v0, %v3736_v6  ;;  %v1847_v0 = vld [vmem:[#allocation13 + $0x30] sm:$0xff] }
 0x3d1   : > { %v1720_v23 = vpack.c.b16 %v1705_v14, %v1704_v21  ;;  %2741 = vrcp.f32 %v1367_v48  ;;  %v1848_v21 = vld [vmem:[#allocation13 + $0x38] sm:$0xff] }
 0x3d2   : > { %v1417_v58 = vpack.c.bf16 %v1401_v24, %v1401_v24  ;;  %v1860_v24 = vpack.c.bf16 %v1848_v21, %v1847_v0 }
 0x3d3   : > { %1744 = vmatmul.bf16.vlgmr.msra.gmra.mxu1 %v1720_v23 }
 0x3d4   : > { %v1484_v59 = vpop.f32.mrf.mxu3  ;;  %v1449_v60 = vunpack.c.l.b16 %v1417_v58  ;;  %v1877_v58 = vld [vmem:[#allocation14 + $0x20] sm:$0xff] }
 0x3d5   : > { %v1521_v2 = vpack.c.bf16 %v1484_v59, %v1484_v59  ;;  %v1878_v59 = vld [vmem:[#allocation14 + $0x28] sm:$0xff] }
 0x3d6   : > { %v1459_v18 = vpack.c.b16 %v1449_v60, %v1448_v17  ;;  %v1845_v17 = vld [vmem:[#allocation13 + $0x20] sm:$0xff]  ;;  %v1891_v60 = vpack.c.bf16 %v1878_v59, %v1877_v58 }
 0x3d7   : > { %v2742_v56 = vpop.eup %2741  ;;  %v1706_v4 = vunpack.c.l.b16 %v1521_v2 }
 0x3d8   : > { %v1369_v1 = vpop.xlane.xlu0 %1368  ;;  %v1402_v37 = vmul.f32 %v2742_v56, %v3742_v62  ;;  %1601 = vmatmul.bf16.gmra.mxu0 %v3471_v61  ;;  %v1851_v61 = vld [vmem:[#allocation13 + $0x50] sm:$0xff] }
 0x3d9   : > { %2743 = vrcp.f32 %v1369_v1  ;;  %1503 = vmatmul.bf16.gmra.mxu3 %v1459_v18  ;;  %v1862_v50 = vpack.c.bf16 %v1852_v36, %v1851_v61  ;;  %v1846_v18 = vld [vmem:[#allocation13 + $0x28] sm:$0xff] }
 0x3da   : > { %v1418_v53 = vpack.c.bf16 %v1402_v37, %v1402_v37  ;;  %v1859_v1 = vpack.c.bf16 %v1846_v18, %v1845_v17  ;;  %v1875_v37 = vld [vmem:[#allocation14 + $0x10] sm:$0xff] }
 0x3db   : > { %1948 = vmatpush.bf16.msrb.mxu2 %v1862_v50 }
 0x3dc   : > { %v1486_v57 = vpop.f32.mrf.mxu3  ;;  %v1450_v13 = vunpack.c.l.b16 %v1418_v53 }
 0x3dd   : > { %v1522_v6 = vpack.c.bf16 %v1486_v57, %v1486_v57 }
 0x3df   : > { %v2744_v63 = vpop.eup %2743  ;;  %v1707_v11 = vunpack.c.l.b16 %v1522_v6  ;;  %1949 = vmatpush.bf16.msrb.mxu2 %v1861_v54  ;;  %v1876_v6 = vld [vmem:[#allocation14 + $0x18] sm:$0xff]  ;;  %v3786_v54 = vld [vmem:[%s3921_s9] ss:$0 sm:$0xff] }
 0x3e0   : > { %v1403_v29 = vmul.f32 %v2744_v63, %v3745_v3  ;;  %v1887_v3 = vld [vmem:[#allocation14 + $0x70] sm:$0xff] }
 0x3e1   : > { %v1721_v9 = vpack.c.b16 %v1707_v11, %v1706_v4  ;;  %v1896_v38 = vpack.c.bf16 %v1888_v25, %v1887_v3  ;;  %v1843_v63 = vld [vmem:[#allocation13 + $0x10] sm:$0xff]  ;;  %v1890_v4 = vpack.c.bf16 %v1876_v6, %v1875_v37  ;;  %v1844_v11 = vld [vmem:[#allocation13 + $0x18] sm:$0xff] }
 0x3e2   : > { %v1419_v16 = vpack.c.bf16 %v1403_v29, %v1403_v29  ;;  %v1858_v53 = vpack.c.bf16 %v1844_v11, %v1843_v63 }
 0x3e3   : > { %1749 = vmatmul.bf16.gmra.mxu1 %v1721_v9  ;;  %1897 = vmatpush.bf16.msra.mxu3 %v1896_v38 }
 0x3e4   : > { %v1489_v30 = vpop.f32.mrf.mxu3  ;;  %v1451_v55 = vunpack.c.l.b16 %v1419_v16  ;;  %1950 = vmatpush.bf16.msrb.mxu2 %v1860_v24 }
 0x3e5   : > { %v1523_v26 = vpack.c.bf16 %v1489_v30, %v1489_v30 }
 0x3e6   : > { %v1460_v12 = vpack.c.b16 %v1451_v55, %v1450_v13 }
 0x3e7   : > { %v1708_v19 = vunpack.c.l.b16 %v1523_v26  ;;  %1898 = vmatpush.bf16.msra.mxu3 %v1895_v44  ;;  %v1874_v26 = vld [vmem:[#allocation14 + $0x8] sm:$0xff] }
 0x3e8   : > { %1606 = vmatmul.bf16.gmra.mxu0 %v3462_v52  ;;  %v1879_v52 = vld [vmem:[#allocation14 + $0x30] sm:$0xff]  ;;  %1951 = vmatpush.bf16.msrb.mxu2 %v1859_v1 }
 0x3e9   : > { %1508 = vmatmul.bf16.gmra.mxu3 %v1460_v12  ;;  %v1892_v48 = vpack.c.bf16 %v1880_v49, %v1879_v52 }
 0x3eb   : > { %1899 = vmatpush.bf16.msra.mxu3 %v1894_v10 }
 0x3ec   : > { %v1491_v39 = vpop.f32.mrf.mxu3  ;;  %1952 = vmatpush.bf16.msrb.mxu2 %v1858_v53 }
 0x3ed   : > { %v1524_v62 = vpack.c.bf16 %v1491_v39, %v1491_v39  ;;  %v1841_v39 = vld [vmem:[#allocation13] sm:$0xff] }
 0x3ef   : > { %v1709_v20 = vunpack.c.l.b16 %v1524_v62  ;;  %1900 = vmatpush.bf16.msra.mxu3 %v1893_v42 }
 0x3f1   : > { %v1722_v47 = vpack.c.b16 %v1709_v20, %v1708_v19  ;;  %v1842_v20 = vld [vmem:[#allocation13 + $0x8] sm:$0xff] }
 0x3f2   : > { %v1857_v3 = vpack.c.bf16 %v1842_v20, %v1841_v39 }
 0x3f3   : > { %1754 = vmatmul.bf16.gmra.mxu1 %v1722_v47  ;;  %1901 = vmatpush.bf16.msra.mxu3 %v1892_v48 }
 0x3f4   : > { %1953 = vmatpush.bf16.msrb.mxu2 %v1857_v3 }
 0x3f5   : > { %v1572_v14 = vpop.f32.mrf.mxu0 }
 0x3f6   : > { %v1573_v2 = vadd.f32 %v3775_v51, %v1572_v14 }
 0x3f7   : > { %1902 = vmatpush.bf16.msra.mxu3 %v1891_v60 }
 0x3f8   : > { %v1628_v16 = vmul.f32 0.2, %v1573_v2  ;;  %vm1612_vm2 = vcmp.gt.f32.partialorder %v1573_v2, 0.0 }
 0x3fa   : > { %v1644_v25 = vsel %vm1612_vm2, %v1573_v2, %v1628_v16 }
 0x3fb   : > { %1903 = vmatpush.bf16.msra.mxu3 %v1890_v4 }
 0x3fd   : > { %v1574_v29 = vpop.f32.mrf.mxu0 }
 0x3fe   : > { %v1575_v30 = vadd.f32 %v3775_v51, %v1574_v29 }
 0x400   : > { %vm1613_vm3 = vcmp.gt.f32.partialorder %v1575_v30, 0.0  ;;  %v1629_v62 = vmul.f32 0.2, %v1575_v30 }
 0x402   : > { %v1645_v27 = vsel %vm1613_vm3, %v1575_v30, %v1629_v62 }
 0x405   : > { %v1577_v33 = vpop.f32.mrf.mxu0 }
 0x406   : > { %v1578_v45 = vadd.f32 %v3775_v51, %v1577_v33 }
 0x408   : > { %v1630_v10 = vmul.f32 0.2, %v1578_v45  ;;  %vm1614_vm4 = vcmp.gt.f32.partialorder %v1578_v45, 0.0 }
 0x40a   : > { %v1646_v41 = vsel %vm1614_vm4, %v1578_v45, %v1630_v10 }
 0x40d   : > { %v1579_v61 = vpop.f32.mrf.mxu0 }
 0x40e   : > { %v1580_v36 = vadd.f32 %v3775_v51, %v1579_v61 }
 0x410   : > { %v1631_v5 = vmul.f32 0.2, %v1580_v36  ;;  %vm1615_vm5 = vcmp.gt.f32.partialorder %v1580_v36, 0.0 }
 0x412   : > { %v1647_v46 = vsel %vm1615_vm5, %v1580_v36, %v1631_v5 }
 0x413   : > { %v1834_v42 = vpack.c.bf16 %v1647_v46, %v1646_v41 }
 0x42f   : > { %v1371_v40 = vpop.xlane.xlu1 %1370 }
 0x430   : > { %2745 = vrcp.f32 %v1371_v40  ;;  %v1582_v40 = vpop.f32.mrf.mxu0 }
 0x431   : > { %v1583_v14 = vadd.f32 %v3775_v51, %v1582_v40  ;;  %v2086_v40 = vld [vmem:[#allocation16 + $0x78] sm:$0xff] }
 0x433   : > { %v1373_v23 = vpop.xlane.xlu2 %1372  ;;  %v1632_v18 = vmul.f32 0.2, %v1583_v14  ;;  %vm1616_vm8 = vcmp.gt.f32.partialorder %v1583_v14, 0.0 }
 0x434   : > { %2747 = vrcp.f32 %v1373_v23 }
 0x435   : > { %v1648_v4 = vsel %vm1616_vm8, %v1583_v14, %v1632_v18 }
 0x436   : > { %v2746_v56 = vpop.eup %2745 }
 0x437   : > { %v1404_v57 = vmul.f32 %v2746_v56, %v3753_v7  ;;  %v1873_v7 = vld [vmem:[#allocation14] sm:$0xff] }
 0x438   : > { %v1889_v19 = vpack.c.bf16 %v1874_v26, %v1873_v7  ;;  %v1584_v60 = vpop.f32.mrf.mxu0 }
 0x439   : > { %v1420_v12 = vpack.c.bf16 %v1404_v57, %v1404_v57  ;;  %v1585_v1 = vadd.f32 %v3775_v51, %v1584_v60 }
 0x43a   : > { %v2748_v9 = vpop.eup %2747  ;;  %1904 = vmatpush.bf16.msra.mxu3 %v1889_v19 }
 0x43b   : > { %v1494_v13 = vpop.f32.mrf.mxu3  ;;  %v1405_v55 = vmul.f32 %v2748_v9, %v3757_v32  ;;  %v1452_v38 = vunpack.c.l.b16 %v1420_v12  ;;  %v1833_v32 = vpack.c.bf16 %v1645_v27, %v1644_v25  ;;  %v1633_v57 = vmul.f32 0.2, %v1585_v1 }
 0x43c   : > { %v1525_v31 = vpack.c.bf16 %v1494_v13, %v1494_v13  ;;  %vm1617_vm9 = vcmp.gt.f32.partialorder %v1585_v1, 0.0 }
 0x43d   : > { %v1421_v47 = vpack.c.bf16 %v1405_v55, %v1405_v55  ;;  %1954 = vmatmul.bf16.vlgmr.msrb.gmra.mxu2 %v1833_v32  ;;  %v1649_v11 = vsel %vm1617_vm9, %v1585_v1, %v1633_v57  ;;  %v2079_v1 = vld [vmem:[#allocation16 + $0x40] sm:$0xff] }
 0x43e   : > { %v1710_v15 = vunpack.c.l.b16 %v1525_v31  ;;  %v1835_v29 = vpack.c.bf16 %v1649_v11, %v1648_v4  ;;  %v2078_v4 = vld [vmem:[#allocation16 + $0x38] sm:$0xff] }
 0x43f   : > { %v1453_v8 = vunpack.c.l.b16 %v1421_v47 }
 0x440   : > { %v1587_v36 = vpop.f32.mrf.mxu0 }
 0x441   : > { %v1461_v28 = vpack.c.b16 %v1453_v8, %v1452_v38 }
 0x443   : > { %v1496_v43 = vpop.f32.mrf.mxu3  ;;  %1513 = vmatmul.bf16.gmra.mxu3 %v1461_v28 }
 0x444   : > { %v1526_v44 = vpack.c.bf16 %v1496_v43, %v1496_v43 }
 0x446   : > { %v1711_v22 = vunpack.c.l.b16 %v1526_v44 }
 0x448   : > { %v1723_v35 = vpack.c.b16 %v1711_v22, %v1710_v15  ;;  %v1589_v5 = vpop.f32.mrf.mxu0 }
 0x449   : > { %v1590_v46 = vadd.f32 %v3775_v51, %v1589_v5 }
 0x44a   : > { %1759 = vmatmul.bf16.gmra.mxu1 %v1723_v35 }
 0x44b   : > { %vm1619_vm15 = vcmp.gt.f32.partialorder %v1590_v46, 0.0 }
 0x44c   : > { %v1499_v50 = vpop.f32.mrf.mxu3 }
 0x44d   : > { %1959 = vmatmul.bf16.gmra.mxu2 %v1834_v42  ;;  %v1527_v52 = vpack.c.bf16 %v1499_v50, %v1499_v50  ;;  %v1588_v50 = vadd.f32 %v3775_v51, %v1587_v36  ;;  %v1635_v42 = vmul.f32 0.2, %v1590_v46 }
 0x44f   : > { %v1712_v48 = vunpack.c.l.b16 %v1527_v52  ;;  %v1634_v41 = vmul.f32 0.2, %v1588_v50  ;;  %vm1618_vm14 = vcmp.gt.f32.partialorder %v1588_v50, 0.0 }
 0x450   : > { %v1745_v34 = vpop.f32.mrf.mxu1  ;;  %v1592_v14 = vpop.f32.mrf.mxu0 }
 0x451   : > { %v1746_v0 = vadd.f32 %v3786_v54, %v1745_v34  ;;  %v2085_v34 = vld [vmem:[#allocation16 + $0x70] sm:$0xff]  ;;  %v1593_v60 = vadd.f32 %v3775_v51, %v1592_v14 }
 0x452   : > { %v2094_v52 = vpack.c.bf16 %v2086_v40, %v2085_v34 }
 0x453   : > { %v1801_v58 = vmul.f32 0.2, %v1746_v0  ;;  %vm1785_vm6 = vcmp.gt.f32.partialorder %v1746_v0, 0.0  ;;  %vm1620_vm0 = vcmp.gt.f32.partialorder %v1593_v60, 0.0 }
 0x454   : > { %v1501_v49 = vpop.f32.mrf.mxu3  ;;  %2099 = vmatpush.bf16.msra.mxu0 %v2094_v52 }
 0x455   : > { %v1528_v21 = vpack.c.bf16 %v1501_v49, %v1501_v49  ;;  %v1817_v37 = vsel %vm1785_vm6, %v1746_v0, %v1801_v58  ;;  %v1650_v49 = vsel %vm1618_vm14, %v1588_v50, %v1634_v41  ;;  %v1651_v0 = vsel %vm1619_vm15, %v1590_v46, %v1635_v42  ;;  %v2081_v58 = vld [vmem:[#allocation16 + $0x50] sm:$0xff] }
 0x457   : > { %v1713_v24 = vunpack.c.l.b16 %v1528_v21  ;;  %v1836_v21 = vpack.c.bf16 %v1651_v0, %v1650_v49 }
 0x458   : > { %v1747_v23 = vpop.f32.mrf.mxu1  ;;  %v1594_v18 = vpop.f32.mrf.mxu0 }
 0x459   : > { %v1724_v59 = vpack.c.b16 %v1713_v24, %v1712_v48  ;;  %v1748_v17 = vadd.f32 %v3786_v54, %v1747_v23  ;;  %v2083_v48 = vld [vmem:[#allocation16 + $0x60] sm:$0xff]  ;;  %v2084_v24 = vld [vmem:[#allocation16 + $0x68] sm:$0xff]  ;;  %v1595_v57 = vadd.f32 %v3775_v51, %v1594_v18 }
 0x45a   : > { %v2093_v23 = vpack.c.bf16 %v2084_v24, %v2083_v48 }
 0x45b   : > { %vm1786_vm7 = vcmp.gt.f32.partialorder %v1748_v17, 0.0  ;;  %v1802_v56 = vmul.f32 0.2, %v1748_v17  ;;  %1764 = vmatmul.bf16.gmra.mxu1 %v1724_v59  ;;  %v2082_v59 = vld [vmem:[#allocation16 + $0x58] sm:$0xff]  ;;  %vm1621_vm1 = vcmp.gt.f32.partialorder %v1595_v57, 0.0 }
 0x45c   : > { %v1504_v2 = vpop.f32.mrf.mxu3  ;;  %2100 = vmatpush.bf16.msra.mxu0 %v2093_v23 }
 0x45d   : > { %v1818_v6 = vsel %vm1786_vm7, %v1748_v17, %v1802_v56  ;;  %1964 = vmatmul.bf16.gmra.mxu2 %v1835_v29  ;;  %v1529_v9 = vpack.c.bf16 %v1504_v2, %v1504_v2  ;;  %v2092_v17 = vpack.c.bf16 %v2082_v59, %v2081_v58  ;;  %v2080_v56 = vld [vmem:[#allocation16 + $0x48] sm:$0xff]  ;;  %v1636_v2 = vmul.f32 0.2, %v1593_v60 }
 0x45e   : > { %v1865_v63 = vpack.c.bf16 %v1818_v6, %v1817_v37  ;;  %v2091_v37 = vpack.c.bf16 %v2080_v56, %v2079_v1  ;;  %v1637_v6 = vmul.f32 0.2, %v1595_v57 }
 0x45f   : > { %v1714_v55 = vunpack.c.l.b16 %v1529_v9  ;;  %v1652_v29 = vsel %vm1620_vm0, %v1593_v60, %v1636_v2 }
 0x460   : > { %v1750_v53 = vpop.f32.mrf.mxu1  ;;  %1905 = vmatmul.bf16.vlgmr.msra.gmra.mxu3 %v1865_v63  ;;  %2101 = vmatpush.bf16.msra.mxu0 %v2092_v17  ;;  %v2077_v63 = vld [vmem:[#allocation16 + $0x30] sm:$0xff] }
 0x461   : > { %v1751_v30 = vadd.f32 %v3786_v54, %v1750_v53  ;;  %v2090_v11 = vpack.c.bf16 %v2078_v4, %v2077_v63  ;;  %v1653_v53 = vsel %vm1621_vm1, %v1595_v57, %v1637_v6 }
 0x463   : > { %v1803_v26 = vmul.f32 0.2, %v1751_v30  ;;  %vm1787_vm10 = vcmp.gt.f32.partialorder %v1751_v30, 0.0 }
 0x464   : > { %v1506_v16 = vpop.f32.mrf.mxu3  ;;  %2102 = vmatpush.bf16.msra.mxu0 %v2091_v37  ;;  %v3812_v37 = vld [vmem:[%s3964_s28] ss:$0 sm:$0xff] }
 0x465   : > { %v1530_v13 = vpack.c.bf16 %v1506_v16, %v1506_v16  ;;  %v1819_v47 = vsel %vm1787_vm10, %v1751_v30, %v1803_v26  ;;  %v1837_v16 = vpack.c.bf16 %v1653_v53, %v1652_v29 }
 0x467   : > { %v1715_v12 = vunpack.c.l.b16 %v1530_v13  ;;  %v1597_v13 = vpop.f32.mrf.mxu0 }
 0x468   : > { %v1752_v7 = vpop.f32.mrf.mxu1  ;;  %2103 = vmatpush.bf16.msra.mxu0 %v2090_v11 }
 0x469   : > { %v1725_v39 = vpack.c.b16 %v1715_v12, %v1714_v55  ;;  %v1753_v62 = vadd.f32 %v3786_v54, %v1752_v7  ;;  %v2075_v55 = vld [vmem:[#allocation16 + $0x20] sm:$0xff]  ;;  %v2076_v12 = vld [vmem:[#allocation16 + $0x28] sm:$0xff] }
 0x46a   : > { %v2089_v7 = vpack.c.bf16 %v2076_v12, %v2075_v55 }
 0x46b   : > { %vm1788_vm11 = vcmp.gt.f32.partialorder %v1753_v62, 0.0  ;;  %v1804_v19 = vmul.f32 0.2, %v1753_v62  ;;  %1769 = vmatmul.bf16.gmra.mxu1 %v1725_v39 }
 0x46c   : > { %v1509_v20 = vpop.f32.mrf.mxu3  ;;  %2104 = vmatpush.bf16.msra.mxu0 %v2089_v7 }
 0x46d   : > { %v1820_v3 = vsel %vm1788_vm11, %v1753_v62, %v1804_v19  ;;  %v1531_v38 = vpack.c.bf16 %v1509_v20, %v1509_v20  ;;  %1969 = vmatmul.bf16.gmra.mxu2 %v1836_v21  ;;  %v2073_v62 = vld [vmem:[#allocation16 + $0x10] sm:$0xff]  ;;  %v2074_v19 = vld [vmem:[#allocation16 + $0x18] sm:$0xff]  ;;  %v1598_v20 = vadd.f32 %v3775_v51, %v1597_v13 }
 0x46e   : > { %v1866_v25 = vpack.c.bf16 %v1820_v3, %v1819_v47  ;;  %v2088_v47 = vpack.c.bf16 %v2074_v19, %v2073_v62 }
 0x46f   : > { %v1716_v33 = vunpack.c.l.b16 %v1531_v38  ;;  %vm1622_vm4 = vcmp.gt.f32.partialorder %v1598_v20, 0.0 }
 0x470   : > { %v1755_v27 = vpop.f32.mrf.mxu1  ;;  %1910 = vmatmul.bf16.gmra.mxu3 %v1866_v25  ;;  %2105 = vmatpush.bf16.msra.mxu0 %v2088_v47 }
 0x471   : > { %v1756_v32 = vadd.f32 %v3786_v54, %v1755_v27 }
 0x473   : > { %v1805_v44 = vmul.f32 0.2, %v1756_v32  ;;  %vm1789_vm12 = vcmp.gt.f32.partialorder %v1756_v32, 0.0 }
 0x474   : > { %v1511_v8 = vpop.f32.mrf.mxu3 }
 0x475   : > { %v1532_v28 = vpack.c.bf16 %v1511_v8, %v1511_v8  ;;  %v1821_v35 = vsel %vm1789_vm12, %v1756_v32, %v1805_v44  ;;  %v1638_v44 = vmul.f32 0.2, %v1598_v20 }
 0x477   : > { %v1717_v31 = vunpack.c.l.b16 %v1532_v28  ;;  %v1599_v28 = vpop.f32.mrf.mxu0  ;;  %v1654_v5 = vsel %vm1622_vm4, %v1598_v20, %v1638_v44 }
 0x478   : > { %v1757_v43 = vpop.f32.mrf.mxu1 }
 0x479   : > { %v1726_v15 = vpack.c.b16 %v1717_v31, %v1716_v33  ;;  %v1758_v22 = vadd.f32 %v3786_v54, %v1757_v43  ;;  %v2071_v33 = vld [vmem:[#allocation16] sm:$0xff]  ;;  %v2072_v31 = vld [vmem:[#allocation16 + $0x8] sm:$0xff] }
 0x47b   : > { %vm1790_vm13 = vcmp.gt.f32.partialorder %v1758_v22, 0.0  ;;  %v1806_v45 = vmul.f32 0.2, %v1758_v22  ;;  %1774 = vmatmul.bf16.gmra.mxu1 %v1726_v15  ;;  %v1600_v15 = vadd.f32 %v3775_v51, %v1599_v28 }
 0x47d   : > { %v1822_v61 = vsel %vm1790_vm13, %v1758_v22, %v1806_v45  ;;  %1974 = vmatmul.bf16.gmra.mxu2 %v1837_v16  ;;  %v2087_v22 = vpack.c.bf16 %v2072_v31, %v2071_v33  ;;  %vm1623_vm5 = vcmp.gt.f32.partialorder %v1600_v15, 0.0 }
 0x47e   : > { %v1867_v10 = vpack.c.bf16 %v1822_v61, %v1821_v35  ;;  %v1639_v61 = vmul.f32 0.2, %v1600_v15 }
 0x47f   : > { %2106 = vmatpush.bf16.msra.mxu0 %v2087_v22  ;;  %v1602_v40 = vpop.f32.mrf.mxu0 }
 0x480   : > { %1915 = vmatmul.bf16.gmra.mxu3 %v1867_v10  ;;  %v1655_v41 = vsel %vm1623_vm5, %v1600_v15, %v1639_v61  ;;  %v1603_v49 = vadd.f32 %v3775_v51, %v1602_v40 }
 0x481   : > { %v1838_v46 = vpack.c.bf16 %v1655_v41, %v1654_v5 }
 0x482   : > { %v1640_v23 = vmul.f32 0.2, %v1603_v49  ;;  %vm1624_vm7 = vcmp.gt.f32.partialorder %v1603_v49, 0.0 }
 0x484   : > { %v1656_v56 = vsel %vm1624_vm7, %v1603_v49, %v1640_v23 }
 0x487   : > { %v1604_v21 = vpop.f32.mrf.mxu0 }
 0x488   : > { %v1605_v58 = vadd.f32 %v3775_v51, %v1604_v21 }
 0x48a   : > { %vm1625_vm9 = vcmp.gt.f32.partialorder %v1605_v58, 0.0  ;;  %v1641_v60 = vmul.f32 0.2, %v1605_v58 }
 0x48c   : > { %v1657_v2 = vsel %vm1625_vm9, %v1605_v58, %v1641_v60 }
 0x48d   : > { %1979 = vmatmul.bf16.gmra.mxu2 %v1838_v46  ;;  %v1839_v63 = vpack.c.bf16 %v1657_v2, %v1656_v56 }
 0x49d   : > { %1984 = vmatmul.bf16.gmra.mxu2 %v1839_v63 }
 0x4c0   : > { %v1955_v42 = vpop.f32.mrf.mxu2 }
 0x4c6   : > { %v1514_v9 = vpop.f32.mrf.mxu3 }
 0x4c7   : > { %v1760_v30 = vpop.f32.mrf.mxu1  ;;  %v1533_v26 = vpack.c.bf16 %v1514_v9, %v1514_v9 }
 0x4c8   : > { %v1761_v39 = vadd.f32 %v3786_v54, %v1760_v30  ;;  %v1957_v24 = vpop.f32.mrf.mxu2 }
 0x4c9   : > { %v1718_v38 = vunpack.c.l.b16 %v1533_v26 }
 0x4ca   : > { %vm1791_vm2 = vcmp.gt.f32.partialorder %v1761_v39, 0.0  ;;  %v1807_v8 = vmul.f32 0.2, %v1761_v39 }
 0x4cc   : > { %v1823_v10 = vsel %vm1791_vm2, %v1761_v39, %v1807_v8 }
 0x4ce   : > { %v1516_v3 = vpop.f32.mrf.mxu3 }
 0x4cf   : > { %v1534_v25 = vpack.c.bf16 %v1516_v3, %v1516_v3  ;;  %v1762_v27 = vpop.f32.mrf.mxu1 }
 0x4d0   : > { %v1763_v32 = vadd.f32 %v3786_v54, %v1762_v27  ;;  %v1960_v53 = vpop.f32.mrf.mxu2 }
 0x4d1   : > { %v1719_v43 = vunpack.c.l.b16 %v1534_v25 }
 0x4d2   : > { %vm1792_vm3 = vcmp.gt.f32.partialorder %v1763_v32, 0.0  ;;  %v1808_v45 = vmul.f32 0.2, %v1763_v32 }
 0x4d3   : > { %v1727_v35 = vpack.c.b16 %v1719_v43, %v1718_v38  ;;  %v1607_v38 = vpop.f32.mrf.mxu0 }
 0x4d4   : > { %v1824_v36 = vsel %vm1792_vm3, %v1763_v32, %v1808_v45  ;;  %v1608_v28 = vadd.f32 %v3775_v51, %v1607_v38 }
 0x4d5   : > { %1779 = vmatmul.bf16.gmra.mxu1 %v1727_v35  ;;  %v1868_v50 = vpack.c.bf16 %v1824_v36, %v1823_v10 }
 0x4d6   : > { %v1642_v44 = vmul.f32 0.2, %v1608_v28  ;;  %vm1626_vm14 = vcmp.gt.f32.partialorder %v1608_v28, 0.0 }
 0x4d7   : > { %1920 = vmatmul.bf16.gmra.mxu3 %v1868_v50 }
 0x4d8   : > { %v1765_v34 = vpop.f32.mrf.mxu1  ;;  %v1962_v27 = vpop.f32.mrf.mxu2  ;;  %v1658_v50 = vsel %vm1626_vm14, %v1608_v28, %v1642_v44 }
 0x4d9   : > { %v1766_v52 = vadd.f32 %v3786_v54, %v1765_v34 }
 0x4db   : > { %v1809_v14 = vmul.f32 0.2, %v1766_v52  ;;  %vm1793_vm6 = vcmp.gt.f32.partialorder %v1766_v52, 0.0  ;;  %v1609_v45 = vpop.f32.mrf.mxu0 }
 0x4dc   : > { %v1610_v10 = vadd.f32 %v3775_v51, %v1609_v45 }
 0x4dd   : > { %v1825_v18 = vsel %vm1793_vm6, %v1766_v52, %v1809_v14 }
 0x4de   : > { %vm1627_vm1 = vcmp.gt.f32.partialorder %v1610_v10, 0.0  ;;  %v1643_v46 = vmul.f32 0.2, %v1610_v10 }
 0x4e0   : > { %v1767_v0 = vpop.f32.mrf.mxu1  ;;  %v1965_v36 = vpop.f32.mrf.mxu2  ;;  %v1659_v49 = vsel %vm1627_vm1, %v1610_v10, %v1643_v46 }
 0x4e1   : > { %v1768_v48 = vadd.f32 %v3786_v54, %v1767_v0  ;;  %v1840_v51 = vpack.c.bf16 %v1659_v49, %v1658_v50 }
 0x4e3   : > { %vm1794_vm8 = vcmp.gt.f32.partialorder %v1768_v48, 0.0  ;;  %v1810_v59 = vmul.f32 0.2, %v1768_v48  ;;  %v1906_v17 = vpop.f32.mrf.mxu3  ;;  %1989 = vmatmul.bf16.gmra.mxu2 %v1840_v51 }
 0x4e4   : > { %v1956_v57 = vadd.f32 %v1955_v42, %v1906_v17 }
 0x4e5   : > { %v1826_v1 = vsel %vm1794_vm8, %v1768_v48, %v1810_v59 }
 0x4e6   : > { %v1869_v6 = vpack.c.bf16 %v1826_v1, %v1825_v18  ;;  %v1999_v11 = vadd.f32 %v3812_v37, %v1956_v57 }
 0x4e8   : > { %v1770_v4 = vpop.f32.mrf.mxu1  ;;  %1925 = vmatmul.bf16.gmra.mxu3 %v1869_v6  ;;  %v2031_v30 = vmul.f32 0.2, %v1999_v11  ;;  %vm2015_vm10 = vcmp.gt.f32.partialorder %v1999_v11, 0.0  ;;  %v1967_v59 = vpop.f32.mrf.mxu2 }
 0x4e9   : > { %v1771_v16 = vadd.f32 %v3786_v54, %v1770_v4 }
 0x4ea   : > { %v2047_v39 = vsel %vm2015_vm10, %v1999_v11, %v2031_v30 }
 0x4eb   : > { %v1908_v29 = vpop.f32.mrf.mxu3  ;;  %v1811_v7 = vmul.f32 0.2, %v1771_v16  ;;  %vm1795_vm12 = vcmp.gt.f32.partialorder %v1771_v16, 0.0 }
 0x4ec   : > { %v1958_v9 = vadd.f32 %v1957_v24, %v1908_v29 }
 0x4ed   : > { %v1827_v3 = vsel %vm1795_vm12, %v1771_v16, %v1811_v7 }
 0x4ee   : > { %v2000_v13 = vadd.f32 %v3812_v37, %v1958_v9 }
 0x4f0   : > { %vm2016_vm11 = vcmp.gt.f32.partialorder %v2000_v13, 0.0  ;;  %v2032_v55 = vmul.f32 0.2, %v2000_v13  ;;  %v1772_v12 = vpop.f32.mrf.mxu1  ;;  %v1970_v4 = vpop.f32.mrf.mxu2 }
 0x4f1   : > { %v1773_v26 = vadd.f32 %v3786_v54, %v1772_v12 }
 0x4f2   : > { %v2048_v62 = vsel %vm2016_vm11, %v2000_v13, %v2032_v55 }
 0x4f3   : > { %vm1796_vm13 = vcmp.gt.f32.partialorder %v1773_v26, 0.0  ;;  %v1812_v19 = vmul.f32 0.2, %v1773_v26  ;;  %v1911_v20 = vpop.f32.mrf.mxu3  ;;  %v2063_v47 = vpack.c.bf16 %v2048_v62, %v2047_v39 }
 0x4f4   : > { %v1961_v8 = vadd.f32 %v1960_v53, %v1911_v20 }
 0x4f5   : > { %2107 = vmatmul.bf16.vlgmr.msra.gmra.mxu0 %v2063_v47  ;;  %v1828_v25 = vsel %vm1796_vm13, %v1773_v26, %v1812_v19 }
 0x4f6   : > { %v1870_v32 = vpack.c.bf16 %v1828_v25, %v1827_v3  ;;  %v2001_v31 = vadd.f32 %v3812_v37, %v1961_v8 }
 0x4f8   : > { %v1775_v33 = vpop.f32.mrf.mxu1  ;;  %1930 = vmatmul.bf16.gmra.mxu3 %v1870_v32  ;;  %v2033_v35 = vmul.f32 0.2, %v2001_v31  ;;  %vm2017_vm15 = vcmp.gt.f32.partialorder %v2001_v31, 0.0  ;;  %v1972_v29 = vpop.f32.mrf.mxu2 }
 0x4f9   : > { %v1776_v22 = vadd.f32 %v3786_v54, %v1775_v33 }
 0x4fa   : > { %v2049_v40 = vsel %vm2017_vm15, %v2001_v31, %v2033_v35  ;;  %v3833_v31 = vld [vmem:[%s3965_s27] ss:$0 sm:$0xff] }
 0x4fb   : > { %v1913_v43 = vpop.f32.mrf.mxu3  ;;  %v1813_v42 = vmul.f32 0.2, %v1776_v22  ;;  %vm1797_vm2 = vcmp.gt.f32.partialorder %v1776_v22, 0.0 }
 0x4fc   : > { %v1963_v15 = vadd.f32 %v1962_v27, %v1913_v43 }
 0x4fd   : > { %v1829_v48 = vsel %vm1797_vm2, %v1776_v22, %v1813_v42 }
 0x4fe   : > { %v2002_v61 = vadd.f32 %v3812_v37, %v1963_v15 }
 0x500   : > { %vm2018_vm0 = vcmp.gt.f32.partialorder %v2002_v61, 0.0  ;;  %v2034_v5 = vmul.f32 0.2, %v2002_v61  ;;  %v1777_v41 = vpop.f32.mrf.mxu1  ;;  %v1975_v39 = vpop.f32.mrf.mxu2 }
 0x501   : > { %v1778_v34 = vadd.f32 %v3786_v54, %v1777_v41 }
 0x502   : > { %v2050_v52 = vsel %vm2018_vm0, %v2002_v61, %v2034_v5 }
 0x503   : > { %vm1798_vm3 = vcmp.gt.f32.partialorder %v1778_v34, 0.0  ;;  %v1814_v0 = vmul.f32 0.2, %v1778_v34  ;;  %v1916_v21 = vpop.f32.mrf.mxu3  ;;  %v2064_v14 = vpack.c.bf16 %v2050_v52, %v2049_v40 }
 0x504   : > { %v1966_v23 = vadd.f32 %v1965_v36, %v1916_v21 }
 0x505   : > { %2112 = vmatmul.bf16.gmra.mxu0 %v2064_v14  ;;  %v1830_v24 = vsel %vm1798_vm3, %v1778_v34, %v1814_v0 }
 0x506   : > { %v1871_v58 = vpack.c.bf16 %v1830_v24, %v1829_v48  ;;  %v2003_v17 = vadd.f32 %v3812_v37, %v1966_v23 }
 0x508   : > { %1935 = vmatmul.bf16.gmra.mxu3 %v1871_v58  ;;  %v2035_v1 = vmul.f32 0.2, %v2003_v17  ;;  %vm2019_vm4 = vcmp.gt.f32.partialorder %v2003_v17, 0.0  ;;  %v1977_v8 = vpop.f32.mrf.mxu2 }
 0x50a   : > { %v2051_v57 = vsel %vm2019_vm4, %v2003_v17, %v2035_v1 }
 0x50b   : > { %v1918_v60 = vpop.f32.mrf.mxu3 }
 0x50c   : > { %v1968_v18 = vadd.f32 %v1967_v59, %v1918_v60 }
 0x50e   : > { %v2004_v56 = vadd.f32 %v3812_v37, %v1968_v18 }
 0x510   : > { %vm2020_vm5 = vcmp.gt.f32.partialorder %v2004_v56, 0.0  ;;  %v2036_v2 = vmul.f32 0.2, %v2004_v56  ;;  %v1980_v45 = vpop.f32.mrf.mxu2 }
 0x512   : > { %v2052_v6 = vsel %vm2020_vm5, %v2004_v56, %v2036_v2 }
 0x513   : > { %v2065_v63 = vpack.c.bf16 %v2052_v6, %v2051_v57 }
 0x515   : > { %2117 = vmatmul.bf16.gmra.mxu0 %v2065_v63 }
 0x518   : > { %v1982_v14 = vpop.f32.mrf.mxu2 }
 0x552   : > { %v1780_v11 = vpop.f32.mrf.mxu1 }
 0x553   : > { %v1781_v53 = vadd.f32 %v3786_v54, %v1780_v11  ;;  %v1985_v11 = vpop.f32.mrf.mxu2 }
 0x555   : > { %v1815_v30 = vmul.f32 0.2, %v1781_v53  ;;  %vm1799_vm6 = vcmp.gt.f32.partialorder %v1781_v53, 0.0 }
 0x557   : > { %v1831_v7 = vsel %vm1799_vm6, %v1781_v53, %v1815_v30 }
 0x55a   : > { %v1782_v9 = vpop.f32.mrf.mxu1  ;;  %v1921_v16 = vpop.f32.mrf.mxu3 }
 0x55b   : > { %v1783_v13 = vadd.f32 %v3786_v54, %v1782_v9  ;;  %v1971_v12 = vadd.f32 %v1970_v4, %v1921_v16 }
 0x55d   : > { %vm1800_vm7 = vcmp.gt.f32.partialorder %v1783_v13, 0.0  ;;  %v1816_v55 = vmul.f32 0.2, %v1783_v13  ;;  %v2005_v19 = vadd.f32 %v3812_v37, %v1971_v12 }
 0x55f   : > { %v1832_v26 = vsel %vm1800_vm7, %v1783_v13, %v1816_v55  ;;  %v2037_v3 = vmul.f32 0.2, %v2005_v19  ;;  %vm2021_vm8 = vcmp.gt.f32.partialorder %v2005_v19, 0.0 }
 0x560   : > { %v1872_v62 = vpack.c.bf16 %v1832_v26, %v1831_v7 }
 0x561   : > { %v2053_v54 = vsel %vm2021_vm8, %v2005_v19, %v2037_v3 }
 0x562   : > { %v1923_v20 = vpop.f32.mrf.mxu3  ;;  %1940 = vmatmul.bf16.gmra.mxu3 %v1872_v62 }
 0x563   : > { %v1973_v47 = vadd.f32 %v1972_v29, %v1923_v20 }
 0x565   : > { %v2006_v25 = vadd.f32 %v3812_v37, %v1973_v47 }
 0x567   : > { %vm2022_vm9 = vcmp.gt.f32.partialorder %v2006_v25, 0.0  ;;  %v2038_v27 = vmul.f32 0.2, %v2006_v25 }
 0x569   : > { %v2054_v38 = vsel %vm2022_vm9, %v2006_v25, %v2038_v27  ;;  %v1987_v25 = vpop.f32.mrf.mxu2 }
 0x56a   : > { %v2066_v32 = vpack.c.bf16 %v2054_v38, %v2053_v54 }
 0x56b   : > { %v1926_v28 = vpop.f32.mrf.mxu3 }
 0x56c   : > { %2122 = vmatmul.bf16.gmra.mxu0 %v2066_v32  ;;  %v1976_v33 = vadd.f32 %v1975_v39, %v1926_v28 }
 0x56e   : > { %v2007_v43 = vadd.f32 %v3812_v37, %v1976_v33 }
 0x570   : > { %v2039_v10 = vmul.f32 0.2, %v2007_v43  ;;  %vm2023_vm11 = vcmp.gt.f32.partialorder %v2007_v43, 0.0 }
 0x572   : > { %v2108_v44 = vpop.f32.mrf.mxu0  ;;  %v2055_v34 = vsel %vm2023_vm11, %v2007_v43, %v2039_v10 }
 0x573   : > { %v1928_v15 = vpop.f32.mrf.mxu3  ;;  %v2109_v22 = vadd.f32 %v3833_v31, %v2108_v44 }
 0x574   : > { %v1978_v35 = vadd.f32 %v1977_v8, %v1928_v15 }
 0x575   : > { %vm2148_vm10 = vcmp.gt.f32.partialorder %v2109_v22, 0.0  ;;  %v2164_v61 = vmul.f32 0.2, %v2109_v22 }
 0x576   : > { %v2008_v36 = vadd.f32 %v3812_v37, %v1978_v35 }
 0x577   : > { %v2180_v50 = vsel %vm2148_vm10, %v2109_v22, %v2164_v61 }
 0x578   : > { %vm2024_vm12 = vcmp.gt.f32.partialorder %v2008_v36, 0.0  ;;  %v2040_v5 = vmul.f32 0.2, %v2008_v36  ;;  %v2212_v41 = vmin.f32 %v2180_v50, 0.0  ;;  %vm2196_vm14 = vcmp.gt.f32.partialorder %v2180_v50, 0.0 }
 0x57a   : > { %v2228_v46 = vmul.f32 1.442695, %v2212_v41  ;;  %v2110_v42 = vpop.f32.mrf.mxu0  ;;  %v2056_v40 = vsel %vm2024_vm12, %v2008_v36, %v2040_v5 }
 0x57b   : > { %v1931_v52 = vpop.f32.mrf.mxu3  ;;  %v2111_v49 = vadd.f32 %v3833_v31, %v2110_v42  ;;  %v2067_v0 = vpack.c.bf16 %v2056_v40, %v2055_v34 }
 0x57c   : > { %2749 = vpow2.f32 %v2228_v46  ;;  %v1981_v51 = vadd.f32 %v1980_v45, %v1931_v52 }
 0x57d   : > { %vm2149_vm13 = vcmp.gt.f32.partialorder %v2111_v49, 0.0  ;;  %v2165_v21 = vmul.f32 0.2, %v2111_v49  ;;  %2127 = vmatmul.bf16.gmra.mxu0 %v2067_v0 }
 0x57e   : > { %v2009_v58 = vadd.f32 %v3812_v37, %v1981_v51 }
 0x57f   : > { %v2181_v48 = vsel %vm2149_vm13, %v2111_v49, %v2165_v21 }
 0x580   : > { %v2213_v24 = vmin.f32 %v2181_v48, 0.0  ;;  %v2041_v6 = vmul.f32 0.2, %v2009_v58  ;;  %vm2025_vm0 = vcmp.gt.f32.partialorder %v2009_v58, 0.0  ;;  %vm2197_vm2 = vcmp.gt.f32.partialorder %v2181_v48, 0.0 }
 0x582   : > { %v2750_v23 = vpop.eup %2749  ;;  %v2230_v59 = vmul.f32 1.442695, %v2213_v24  ;;  %v2113_v17 = vpop.f32.mrf.mxu0  ;;  %v2057_v13 = vsel %vm2025_vm0, %v2009_v58, %v2041_v6 }
 0x583   : > { %v2513_v60 = vadd.f32 -1.0, %v2750_v23  ;;  %v1933_v18 = vpop.f32.mrf.mxu3  ;;  %v2114_v1 = vadd.f32 %v3833_v31, %v2113_v17  ;;  %v1990_v17 = vpop.f32.mrf.mxu2 }
 0x584   : > { %2751 = vpow2.f32 %v2230_v59  ;;  %v1983_v56 = vadd.f32 %v1982_v14, %v1933_v18 }
 0x585   : > { %v2276_v2 = vsel %vm2196_vm14, %v2180_v50, %v2513_v60  ;;  %vm2150_vm15 = vcmp.gt.f32.partialorder %v2114_v1, 0.0  ;;  %v2166_v57 = vmul.f32 0.2, %v2114_v1 }
 0x586   : > { %2292 = vst [vmem:[%s3842_s20] sm:$0xff] %v2276_v2  ;;  %v2010_v63 = vadd.f32 %v3812_v37, %v1983_v56 }
 0x587   : > { %v2182_v4 = vsel %vm2150_vm15, %v2114_v1, %v2166_v57 }
 0x588   : > { %vm2026_vm1 = vcmp.gt.f32.partialorder %v2010_v63, 0.0  ;;  %v2042_v29 = vmul.f32 0.2, %v2010_v63  ;;  %v2214_v53 = vmin.f32 %v2182_v4, 0.0  ;;  %vm2198_vm4 = vcmp.gt.f32.partialorder %v2182_v4, 0.0 }
 0x58a   : > { %v2752_v9 = vpop.eup %2751  ;;  %v2232_v16 = vmul.f32 1.442695, %v2214_v53  ;;  %v2115_v30 = vpop.f32.mrf.mxu0  ;;  %v2058_v55 = vsel %vm2026_vm1, %v2010_v63, %v2042_v29 }
 0x58b   : > { %v2514_v12 = vadd.f32 -1.0, %v2752_v9  ;;  %v1936_v7 = vpop.f32.mrf.mxu3  ;;  %v2116_v26 = vadd.f32 %v3833_v31, %v2115_v30  ;;  %v2068_v39 = vpack.c.bf16 %v2058_v55, %v2057_v13  ;;  %v1992_v6 = vpop.f32.mrf.mxu2 }
 0x58c   : > { %2753 = vpow2.f32 %v2232_v16  ;;  %v1986_v20 = vadd.f32 %v1985_v11, %v1936_v7 }
 0x58d   : > { %v2277_v62 = vsel %vm2197_vm2, %v2181_v48, %v2514_v12  ;;  %vm2151_vm3 = vcmp.gt.f32.partialorder %v2116_v26, 0.0  ;;  %v2167_v19 = vmul.f32 0.2, %v2116_v26  ;;  %2132 = vmatmul.bf16.gmra.mxu0 %v2068_v39 }
 0x58e   : > { %2293 = vst [vmem:[%s3842_s20 + $0x8] sm:$0xff] %v2277_v62  ;;  %v2011_v54 = vadd.f32 %v3812_v37, %v1986_v20 }
 0x58f   : > { %v2183_v47 = vsel %vm2151_vm3, %v2116_v26, %v2167_v19 }
 0x590   : > { %v2215_v3 = vmin.f32 %v2183_v47, 0.0  ;;  %v2043_v22 = vmul.f32 0.2, %v2011_v54  ;;  %vm2027_vm6 = vcmp.gt.f32.partialorder %v2011_v54, 0.0  ;;  %vm2199_vm8 = vcmp.gt.f32.partialorder %v2183_v47, 0.0 }
 0x592   : > { %v2754_v27 = vpop.eup %2753  ;;  %v2234_v38 = vmul.f32 1.442695, %v2215_v3  ;;  %v2118_v8 = vpop.f32.mrf.mxu0  ;;  %v2059_v41 = vsel %vm2027_vm6, %v2011_v54, %v2043_v22 }
 0x593   : > { %v2515_v32 = vadd.f32 -1.0, %v2754_v27  ;;  %v1938_v28 = vpop.f32.mrf.mxu3  ;;  %v2119_v33 = vadd.f32 %v3833_v31, %v2118_v8 }
 0x594   : > { %2755 = vpow2.f32 %v2234_v38  ;;  %v1988_v43 = vadd.f32 %v1987_v25, %v1938_v28 }
 0x595   : > { %v2278_v44 = vsel %vm2198_vm4, %v2182_v4, %v2515_v32  ;;  %vm2152_vm5 = vcmp.gt.f32.partialorder %v2119_v33, 0.0  ;;  %v2168_v15 = vmul.f32 0.2, %v2119_v33 }
 0x596   : > { %2294 = vst [vmem:[%s3842_s20 + $0x10] sm:$0xff] %v2278_v44  ;;  %v2012_v45 = vadd.f32 %v3812_v37, %v1988_v43 }
 0x597   : > { %v2184_v35 = vsel %vm2152_vm5, %v2119_v33, %v2168_v15 }
 0x598   : > { %vm2028_vm7 = vcmp.gt.f32.partialorder %v2012_v45, 0.0  ;;  %v2044_v61 = vmul.f32 0.2, %v2012_v45  ;;  %v2216_v10 = vmin.f32 %v2184_v35, 0.0  ;;  %vm2200_vm10 = vcmp.gt.f32.partialorder %v2184_v35, 0.0 }
 0x59a   : > { %v2756_v36 = vpop.eup %2755  ;;  %v2236_v50 = vmul.f32 1.442695, %v2216_v10  ;;  %v2120_v5 = vpop.f32.mrf.mxu0  ;;  %v2060_v46 = vsel %vm2028_vm7, %v2012_v45, %v2044_v61 }
 0x59b   : > { %v2516_v42 = vadd.f32 -1.0, %v2756_v36  ;;  %v2121_v34 = vadd.f32 %v3833_v31, %v2120_v5  ;;  %v2069_v40 = vpack.c.bf16 %v2060_v46, %v2059_v41 }
 0x59c   : > { %2757 = vpow2.f32 %v2236_v50 }
 0x59d   : > { %v2279_v52 = vsel %vm2199_vm8, %v2183_v47, %v2516_v42  ;;  %vm2153_vm9 = vcmp.gt.f32.partialorder %v2121_v34, 0.0  ;;  %v2169_v49 = vmul.f32 0.2, %v2121_v34  ;;  %2137 = vmatmul.bf16.gmra.mxu0 %v2069_v40 }
 0x59e   : > { %2295 = vst [vmem:[%s3842_s20 + $0x18] sm:$0xff] %v2279_v52 }
 0x59f   : > { %v2185_v0 = vsel %vm2153_vm9, %v2121_v34, %v2169_v49 }
 0x5a0   : > { %v2217_v21 = vmin.f32 %v2185_v0, 0.0  ;;  %vm2201_vm11 = vcmp.gt.f32.partialorder %v2185_v0, 0.0 }
 0x5a2   : > { %v2758_v14 = vpop.eup %2757  ;;  %v2238_v51 = vmul.f32 1.442695, %v2217_v21 }
 0x5a3   : > { %v2517_v48 = vadd.f32 -1.0, %v2758_v14 }
 0x5a4   : > { %2759 = vpow2.f32 %v2238_v51 }
 0x5a5   : > { %v2280_v24 = vsel %vm2200_vm10, %v2184_v35, %v2517_v48 }
 0x5a6   : > { %2296 = vst [vmem:[%s3842_s20 + $0x20] sm:$0xff] %v2280_v24 }
 0x5aa   : > { %v2760_v23 = vpop.eup %2759 }
 0x5ab   : > { %v2518_v58 = vadd.f32 -1.0, %v2760_v23 }
 0x5ad   : > { %v2281_v59 = vsel %vm2201_vm11, %v2185_v0, %v2518_v58 }
 0x5ae   : > { %2297 = vst [vmem:[%s3842_s20 + $0x28] sm:$0xff] %v2281_v59 }
 0x5e5   : > { %v1941_v60 = vpop.f32.mrf.mxu3 }
 0x5e6   : > { %v1991_v18 = vadd.f32 %v1990_v17, %v1941_v60 }
 0x5e8   : > { %v2013_v2 = vadd.f32 %v3812_v37, %v1991_v18 }
 0x5e9   : > { %v2123_v1 = vpop.f32.mrf.mxu0 }
 0x5ea   : > { %v2124_v56 = vadd.f32 %v3833_v31, %v2123_v1  ;;  %v2045_v53 = vmul.f32 0.2, %v2013_v2  ;;  %vm2029_vm13 = vcmp.gt.f32.partialorder %v2013_v2, 0.0 }
 0x5ec   : > { %vm2154_vm12 = vcmp.gt.f32.partialorder %v2124_v56, 0.0  ;;  %v2170_v57 = vmul.f32 0.2, %v2124_v56  ;;  %v2061_v7 = vsel %vm2029_vm13, %v2013_v2, %v2045_v53 }
 0x5ed   : > { %v1943_v63 = vpop.f32.mrf.mxu3 }
 0x5ee   : > { %v2186_v4 = vsel %vm2154_vm12, %v2124_v56, %v2170_v57  ;;  %v1993_v11 = vadd.f32 %v1992_v6, %v1943_v63 }
 0x5ef   : > { %v2218_v29 = vmin.f32 %v2186_v4, 0.0  ;;  %vm2202_vm0 = vcmp.gt.f32.partialorder %v2186_v4, 0.0 }
 0x5f0   : > { %v2014_v9 = vadd.f32 %v3812_v37, %v1993_v11 }
 0x5f1   : > { %v2240_v16 = vmul.f32 1.442695, %v2218_v29  ;;  %v2125_v30 = vpop.f32.mrf.mxu0 }
 0x5f2   : > { %vm2030_vm14 = vcmp.gt.f32.partialorder %v2014_v9, 0.0  ;;  %v2046_v13 = vmul.f32 0.2, %v2014_v9  ;;  %v2126_v55 = vadd.f32 %v3833_v31, %v2125_v30 }
 0x5f3   : > { %2761 = vpow2.f32 %v2240_v16 }
 0x5f4   : > { %vm2155_vm15 = vcmp.gt.f32.partialorder %v2126_v55, 0.0  ;;  %v2171_v12 = vmul.f32 0.2, %v2126_v55  ;;  %v2062_v26 = vsel %vm2030_vm14, %v2014_v9, %v2046_v13 }
 0x5f5   : > { %v2070_v39 = vpack.c.bf16 %v2062_v26, %v2061_v7 }
 0x5f6   : > { %v2187_v62 = vsel %vm2155_vm15, %v2126_v55, %v2171_v12 }
 0x5f7   : > { %v2219_v19 = vmin.f32 %v2187_v62, 0.0  ;;  %2142 = vmatmul.bf16.gmra.mxu0 %v2070_v39  ;;  %vm2203_vm2 = vcmp.gt.f32.partialorder %v2187_v62, 0.0 }
 0x5f9   : > { %v2762_v20 = vpop.eup %2761  ;;  %v2242_v47 = vmul.f32 1.442695, %v2219_v19 }
 0x5fa   : > { %v2519_v37 = vadd.f32 -1.0, %v2762_v20  ;;  %v2128_v3 = vpop.f32.mrf.mxu0 }
 0x5fb   : > { %2763 = vpow2.f32 %v2242_v47  ;;  %v2129_v25 = vadd.f32 %v3833_v31, %v2128_v3 }
 0x5fc   : > { %v2282_v27 = vsel %vm2202_vm0, %v2186_v4, %v2519_v37 }
 0x5fd   : > { %2298 = vst [vmem:[%s3842_s20 + $0x30] sm:$0xff] %v2282_v27  ;;  %vm2156_vm1 = vcmp.gt.f32.partialorder %v2129_v25, 0.0  ;;  %v2172_v54 = vmul.f32 0.2, %v2129_v25 }
 0x5ff   : > { %v2188_v38 = vsel %vm2156_vm1, %v2129_v25, %v2172_v54 }
 0x600   : > { %v2220_v8 = vmin.f32 %v2188_v38, 0.0  ;;  %vm2204_vm4 = vcmp.gt.f32.partialorder %v2188_v38, 0.0 }
 0x601   : > { %v2764_v32 = vpop.eup %2763 }
 0x602   : > { %v2520_v28 = vadd.f32 -1.0, %v2764_v32  ;;  %v2244_v33 = vmul.f32 1.442695, %v2220_v8  ;;  %v2130_v43 = vpop.f32.mrf.mxu0 }
 0x603   : > { %v2131_v44 = vadd.f32 %v3833_v31, %v2130_v43 }
 0x604   : > { %v2283_v15 = vsel %vm2203_vm2, %v2187_v62, %v2520_v28  ;;  %2765 = vpow2.f32 %v2244_v33 }
 0x605   : > { %2299 = vst [vmem:[%s3842_s20 + $0x38] sm:$0xff] %v2283_v15  ;;  %vm2157_vm3 = vcmp.gt.f32.partialorder %v2131_v44, 0.0  ;;  %v2173_v22 = vmul.f32 0.2, %v2131_v44 }
 0x607   : > { %v2189_v45 = vsel %vm2157_vm3, %v2131_v44, %v2173_v22 }
 0x608   : > { %v2221_v35 = vmin.f32 %v2189_v45, 0.0  ;;  %vm2205_vm6 = vcmp.gt.f32.partialorder %v2189_v45, 0.0 }
 0x60a   : > { %v2766_v61 = vpop.eup %2765  ;;  %v2246_v10 = vmul.f32 1.442695, %v2221_v35  ;;  %v2133_v36 = vpop.f32.mrf.mxu0 }
 0x60b   : > { %v2521_v50 = vadd.f32 -1.0, %v2766_v61  ;;  %v2134_v5 = vadd.f32 %v3833_v31, %v2133_v36 }
 0x60c   : > { %2767 = vpow2.f32 %v2246_v10 }
 0x60d   : > { %v2284_v41 = vsel %vm2204_vm4, %v2188_v38, %v2521_v50  ;;  %vm2158_vm5 = vcmp.gt.f32.partialorder %v2134_v5, 0.0  ;;  %v2174_v46 = vmul.f32 0.2, %v2134_v5 }
 0x60e   : > { %2300 = vst [vmem:[%s3842_s20 + $0x40] sm:$0xff] %v2284_v41 }
 0x60f   : > { %v2190_v42 = vsel %vm2158_vm5, %v2134_v5, %v2174_v46 }
 0x610   : > { %v2222_v34 = vmin.f32 %v2190_v42, 0.0  ;;  %vm2206_vm8 = vcmp.gt.f32.partialorder %v2190_v42, 0.0 }
 0x612   : > { %v2768_v40 = vpop.eup %2767  ;;  %v2248_v52 = vmul.f32 1.442695, %v2222_v34  ;;  %v2135_v49 = vpop.f32.mrf.mxu0 }
 0x613   : > { %v2522_v0 = vadd.f32 -1.0, %v2768_v40  ;;  %v2136_v21 = vadd.f32 %v3833_v31, %v2135_v49 }
 0x614   : > { %2769 = vpow2.f32 %v2248_v52 }
 0x615   : > { %v2285_v14 = vsel %vm2205_vm6, %v2189_v45, %v2522_v0  ;;  %vm2159_vm7 = vcmp.gt.f32.partialorder %v2136_v21, 0.0  ;;  %v2175_v51 = vmul.f32 0.2, %v2136_v21 }
 0x616   : > { %2301 = vst [vmem:[%s3842_s20 + $0x48] sm:$0xff] %v2285_v14 }
 0x617   : > { %v2191_v48 = vsel %vm2159_vm7, %v2136_v21, %v2175_v51 }
 0x618   : > { %v2223_v24 = vmin.f32 %v2191_v48, 0.0  ;;  %vm2207_vm10 = vcmp.gt.f32.partialorder %v2191_v48, 0.0 }
 0x61a   : > { %v2770_v23 = vpop.eup %2769  ;;  %v2250_v58 = vmul.f32 1.442695, %v2223_v24  ;;  %v2138_v59 = vpop.f32.mrf.mxu0 }
 0x61b   : > { %v2523_v17 = vadd.f32 -1.0, %v2770_v23  ;;  %v2139_v60 = vadd.f32 %v3833_v31, %v2138_v59 }
 0x61c   : > { %2771 = vpow2.f32 %v2250_v58 }
 0x61d   : > { %v2286_v18 = vsel %vm2206_vm8, %v2190_v42, %v2523_v17  ;;  %vm2160_vm9 = vcmp.gt.f32.partialorder %v2139_v60, 0.0  ;;  %v2176_v1 = vmul.f32 0.2, %v2139_v60 }
 0x61e   : > { %2302 = vst [vmem:[%s3842_s20 + $0x50] sm:$0xff] %v2286_v18 }
 0x61f   : > { %v2192_v56 = vsel %vm2160_vm9, %v2139_v60, %v2176_v1 }
 0x620   : > { %v2224_v2 = vmin.f32 %v2192_v56, 0.0  ;;  %vm2208_vm12 = vcmp.gt.f32.partialorder %v2192_v56, 0.0 }
 0x622   : > { %v2772_v57 = vpop.eup %2771  ;;  %v2252_v6 = vmul.f32 1.442695, %v2224_v2  ;;  %v2140_v63 = vpop.f32.mrf.mxu0 }
 0x623   : > { %v2524_v4 = vadd.f32 -1.0, %v2772_v57  ;;  %v2141_v11 = vadd.f32 %v3833_v31, %v2140_v63 }
 0x624   : > { %2773 = vpow2.f32 %v2252_v6 }
 0x625   : > { %v2287_v29 = vsel %vm2207_vm10, %v2191_v48, %v2524_v4  ;;  %vm2161_vm11 = vcmp.gt.f32.partialorder %v2141_v11, 0.0  ;;  %v2177_v53 = vmul.f32 0.2, %v2141_v11 }
 0x626   : > { %2303 = vst [vmem:[%s3842_s20 + $0x58] sm:$0xff] %v2287_v29 }
 0x627   : > { %v2193_v9 = vsel %vm2161_vm11, %v2141_v11, %v2177_v53 }
 0x628   : > { %v2225_v16 = vmin.f32 %v2193_v9, 0.0  ;;  %vm2209_vm13 = vcmp.gt.f32.partialorder %v2193_v9, 0.0 }
 0x62a   : > { %v2774_v30 = vpop.eup %2773  ;;  %v2254_v13 = vmul.f32 1.442695, %v2225_v16 }
 0x62b   : > { %v2525_v55 = vadd.f32 -1.0, %v2774_v30 }
 0x62c   : > { %2775 = vpow2.f32 %v2254_v13 }
 0x62d   : > { %v2288_v12 = vsel %vm2208_vm12, %v2192_v56, %v2525_v55 }
 0x62e   : > { %2304 = vst [vmem:[%s3842_s20 + $0x60] sm:$0xff] %v2288_v12 }
 0x632   : > { %v2776_v7 = vpop.eup %2775 }
 0x633   : > { %v2526_v26 = vadd.f32 -1.0, %v2776_v7 }
 0x635   : > { %v2289_v39 = vsel %vm2209_vm13, %v2193_v9, %v2526_v26 }
 0x636   : > { %2305 = vst [vmem:[%s3842_s20 + $0x68] sm:$0xff] %v2289_v39 }
 0x674   : > { %v2143_v62 = vpop.f32.mrf.mxu0 }
 0x675   : > { %v2144_v19 = vadd.f32 %v3833_v31, %v2143_v62 }
 0x677   : > { %vm2162_vm14 = vcmp.gt.f32.partialorder %v2144_v19, 0.0  ;;  %v2178_v20 = vmul.f32 0.2, %v2144_v19 }
 0x679   : > { %v2194_v47 = vsel %vm2162_vm14, %v2144_v19, %v2178_v20 }
 0x67a   : > { %v2226_v37 = vmin.f32 %v2194_v47, 0.0  ;;  %vm2210_vm0 = vcmp.gt.f32.partialorder %v2194_v47, 0.0 }
 0x67c   : > { %v2256_v3 = vmul.f32 1.442695, %v2226_v37  ;;  %v2145_v25 = vpop.f32.mrf.mxu0 }
 0x67d   : > { %v2146_v27 = vadd.f32 %v3833_v31, %v2145_v25 }
 0x67e   : > { %2777 = vpow2.f32 %v2256_v3 }
 0x67f   : > { %vm2163_vm15 = vcmp.gt.f32.partialorder %v2146_v27, 0.0  ;;  %v2179_v54 = vmul.f32 0.2, %v2146_v27 }
 0x681   : > { %v2195_v38 = vsel %vm2163_vm15, %v2146_v27, %v2179_v54 }
 0x682   : > { %v2227_v8 = vmin.f32 %v2195_v38, 0.0  ;;  %vm2211_vm1 = vcmp.gt.f32.partialorder %v2195_v38, 0.0 }
 0x684   : > { %v2778_v32 = vpop.eup %2777  ;;  %v2258_v28 = vmul.f32 1.442695, %v2227_v8 }
 0x685   : > { %v2527_v33 = vadd.f32 -1.0, %v2778_v32 }
 0x686   : > { %2779 = vpow2.f32 %v2258_v28 }
 0x687   : > { %v2290_v43 = vsel %vm2210_vm0, %v2194_v47, %v2527_v33 }
 0x688   : > { %2306 = vst [vmem:[%s3842_s20 + $0x70] sm:$0xff] %v2290_v43 }
 0x68c   : > { %v2780_v31 = vpop.eup %2779 }
 0x68d   : > { %v2528_v44 = vadd.f32 -1.0, %v2780_v31 }
 0x68f   : > { %v2291_v15 = vsel %vm2211_vm1, %v2195_v38, %v2528_v44 }
 0x690   : > { %2307 = vst [vmem:[%s3842_s20 + $0x78] sm:$0xff] %v2291_v15 }
 0x691   : > { %3078 = shalt.err (!%p3075_p5)
}
 0x692   : > { %s3148_s6 = smov 128   ;;  %s3149_s24 = smov 8  }
 0x693   : > { %2585 = dma.vmem_to_hbm [thread:$0]  (%p3351_p0), %s2322_s13, 2048, %s2324_s30, %s2309_s25, %s3148_s6, %s3148_s6, %s3149_s24  }
 0x694 PF: > { %s2338_s14 = sand.u32 1, %s3125_s18   ;;  %p3967_p10 = scmp.ge.s32.totalorder %s3137_s21, 2 }
 0x695   : > { %s2339_s27 = scalar_lea.sflag [#allocation4], %s2338_s14 }
 0x696   : > { %p2617_p11 = pnand %p3967_p10, %p3357_p6 }
 0x698   : > { %p2618_p12 = pneg %p2617_p11 }
 0x69a   : > { %3120 = dma.done.wait (%p2618_p12), %s2339_s27, 2048  }
 0x69b   : > { %3122 = vsyncadd (%p2618_p12), %s2339_s27, 4294965248  ;;  %s3968_s20 = sld [smem:[#allocation25_spill]]  ;;  %p34_p2 = scmp.ge.s32.totalorder %s3327_s29, 4  }
 0x69c   : > { %s3969_s0 = sld [smem:[#allocation26_spill]]  ;;  %s3970_s18 = smov %s3129_s19 }
 0x69d   : > { %s3973_s21 = smov %s3327_s29 }
 0x69e   :  { %36 = sbr.rel (!%p34_p2) target bundleno = 22 (0x16), region = 166 }
 0x6a1   : > { %s3971_s19 = smov %s3968_s20 }
 0x6a2   : > { %s3972_s20 = smov %s3969_s0 }
 0x6a3   :  { %2345 = vsyncpa [#allocation3], 1 }
 0x6a4   :  { %2347 = vsyncpa [#allocation3 + $0x1], 1 }
 0x6a5   :  { %2348 = vsyncpa [#allocation6], 1 }
 0x6a6   :  { %2350 = vsyncpa [#allocation6 + $0x1], 1 }
 0x6a7   :  { %2351 = vsyncpa [#allocation9], 1 }
 0x6a8   :  { %2352 = vsyncpa [#allocation12], 1 }
 0x6a9   :  { %2353 = vsyncpa [#allocation15], 1 }
 0x6aa   :  { %2354 = vsyncpa [#allocation4], 1 }
 0x6ab   :  { %2356 = vsyncpa [#allocation4 + $0x1], 1 }

</bundles_post_ra>
